<compile_context>
chip_gen: v7x
topology: tpu7x:2x2x1
jax: 0.10.0
libtpu: 0.0.40
codegen_flags: <defaults>
</compile_context>

<pallas_src>
import math

import jax
import jax.numpy as jnp
import numpy as np
from jax.experimental import pallas as pl
from jax.experimental.pallas import tpu as pltpu

WINDOW_SIZE = 11
SIGMA = 1.5
C1 = 0.01 ** 2
C2 = 0.03 ** 2


def _cdiv(a, b):
    return -(-a // b)


def _round_up(a, b):
    return _cdiv(a, b) * b


def _gaussian_1d(window_size: int, sigma: float) -> np.ndarray:
    g = np.array(
        [math.exp(-((x - window_size // 2) ** 2) / float(2 * sigma ** 2))
         for x in range(window_size)],
        dtype=np.float64,
    )
    return (g / g.sum()).astype(np.float32)


def _toeplitz_blur_matrix(n: int, n_pad: int, window_size: int, sigma: float) -> np.ndarray:
    """T (n_pad, n_pad) such that (T @ x)[i] = sum_k g[k]*x[i+k-pad], zero-padded.

    Rows/cols >= n are zero, so zero-padded rows neither produce nor receive
    contributions."""
    g = _gaussian_1d(window_size, sigma)
    pad = window_size // 2
    t = np.zeros((n_pad, n_pad), dtype=np.float32)
    for i in range(n):
        for j in range(max(0, i - pad), min(n, i + pad + 1)):
            t[i, j] = g[j - i + pad]
    return t


def _lane_weight_masks(window_size: int, sigma: float, w_pad: int, BW: int) -> np.ndarray:
    """(window_size, 5*BW) constants: tap k carries weight g[k] only where the
    shifted lane stays inside its own w_pad-wide plane group (zero padding)."""
    g = _gaussian_1d(window_size, sigma)
    pad = window_size // 2
    lanes = 5 * BW
    j = np.arange(lanes) % w_pad
    wm = np.zeros((window_size, lanes), dtype=np.float32)
    for k in range(window_size):
        d = k - pad
        valid = (j + d >= 0) & (j + d < w_pad)
        wm[k] = np.where(valid, g[k], 0.0).astype(np.float32)
    return wm


def _make_ssim_kernel(h, w, h_pad, w_pad, B, BW, P, P_pad, window_size):
    pad = window_size // 2
    lanes5 = 5 * BW

    def kernel(x1_ref, x2_ref, th_ref, wmask_ref, out_ref):
        i = pl.program_id(0)

        x1 = x1_ref[...]                          # (h_pad, BW) lane-dense planes
        x2 = x2_ref[...]

        # Five quantities share one row blur: stack them along the lane axis.
        slab = jnp.concatenate([x1, x2, x1 * x1, x2 * x2, x1 * x2], axis=1)

        # Row (H) blur: one shared (h_pad,h_pad) Toeplitz matmul on the MXU.
        y = jnp.dot(th_ref[...], slab,
                    preferred_element_type=jnp.float32,
                    precision=jax.lax.Precision.HIGHEST)   # (h_pad, 5*BW)

        # Column (W) blur: 11-tap shift-and-accumulate via pltpu.roll (XLU).
        # The weighted masks (constant input) implement per-plane zero padding
        # and kill any wrap-around across plane / quantity-group boundaries.
        acc = y * wmask_ref[pad:pad + 1, :]
        for k in range(window_size):
            d = k - pad
            if d == 0:
                continue
            shifted = pltpu.roll(y, shift=(-d) % lanes5, axis=1)
            acc = acc + shifted * wmask_ref[k:k + 1, :]

        mu1 = acc[:, 0 * BW:1 * BW]               # lane slices at multiples of 128
        mu2 = acc[:, 1 * BW:2 * BW]
        e11 = acc[:, 2 * BW:3 * BW]
        e22 = acc[:, 3 * BW:4 * BW]
        e12 = acc[:, 4 * BW:5 * BW]

        mu1_sq = mu1 * mu1
        mu2_sq = mu2 * mu2
        mu1_mu2 = mu1 * mu2
        sigma1_sq = e11 - mu1_sq
        sigma2_sq = e22 - mu2_sq
        sigma12 = e12 - mu1_mu2

        num = (2.0 * mu1_mu2 + C1) * (2.0 * sigma12 + C2)
        den = (mu1_sq + mu2_sq + C1) * (sigma1_sq + sigma2_sq + C2)
        ssim_map = num / den                      # (h_pad, BW)

        # Static (trace-time) decisions: only emit padding masks when needed.
        if h_pad > h:
            row = jax.lax.broadcasted_iota(jnp.int32, (h_pad, BW), 0)
            ssim_map = jnp.where(row < h, ssim_map, 0.0)
        if w_pad > w:
            col = jax.lax.broadcasted_iota(jnp.int32, (h_pad, BW), 1) % w_pad
            ssim_map = jnp.where(col < w, ssim_map, 0.0)

        col_sum = jnp.sum(ssim_map, axis=0, keepdims=True)   # (1, BW) lane-dense

        if P_pad > P:
            # Only the last block can contain zero-padded planes (ssim == 1
            # there, so the mask is load-bearing); gate the divide/select.
            last = pl.num_programs(0) - 1

            @pl.when(i == last)
            def _():
                lane = jax.lax.broadcasted_iota(jnp.int32, (1, BW), 1)
                plane = i * B + lane // w_pad
                out_ref[...] = jnp.where(plane < P, col_sum, 0.0)

            @pl.when(i != last)
            def _():
                out_ref[...] = col_sum
        else:
            out_ref[...] = col_sum

    return kernel


def ssim(img1: jax.Array, img2: jax.Array, window_size: int = WINDOW_SIZE) -> jax.Array:
    """SSIM(img1, img2), size_average=True. Inputs are NCHW float-like."""
    assert img1.shape == img2.shape
    n, c, h, w = img1.shape
    P = n * c

    # Generation-dependent lane target: v4/v5 saturate at 128, v6e/v7x at 256.
    kind = jax.devices()[0].device_kind.lower()
    lane_target = 128 if ("v4" in kind or "v5" in kind) else 256

    # Pad W so the packed lane width is always a multiple of 128 (unmasked
    # stores, valid BlockSpecs); pad H to a multiple of 8 (aligned sublanes).
    if w >= 128:
        w_pad = _round_up(w, 128)
    else:
        w_pad = 1 << (w - 1).bit_length()         # next power of two, <= 128
    h_pad = _round_up(h, 8)

    B_min = max(1, 128 // w_pad)                  # smallest B with B*w_pad % 128 == 0
    B = max(B_min, (lane_target // w_pad // B_min) * B_min)
    B = min(B, _round_up(P, B_min))               # don't pack far more planes than exist
    # v7x megacore: prefer >= 2 grid steps when the plane count allows it.
    if _cdiv(P, B) < 2 and _cdiv(P, B_min) >= 2:
        B = max(B_min, min(B, _round_up(_cdiv(P, 2), B_min)))
    num_blocks = _cdiv(P, B)
    P_pad = num_blocks * B
    BW = B * w_pad

    # Fuse x1/x2 packing into one pad + transpose (planes side by side on lanes).
    x = jnp.stack([jnp.reshape(img1, (P, h, w)), jnp.reshape(img2, (P, h, w))])
    x = x.astype(jnp.float32)
    x = jnp.pad(x, ((0, 0), (0, P_pad - P), (0, h_pad - h), (0, w_pad - w)))
    x = jnp.transpose(x, (0, 2, 1, 3)).reshape(2, h_pad, P_pad * w_pad)
    x1_2d, x2_2d = x[0], x[1]
    # TODO(synk): keep the natural (P,h,w) layout with a 3-D BlockSpec and do the
    # lane packing in-kernel to drop this extra HBM pre-pass entirely.

    t_h = jnp.asarray(_toeplitz_blur_matrix(h, h_pad, window_size, SIGMA))
    wmask = jnp.asarray(_lane_weight_masks(window_size, SIGMA, w_pad, BW))

    kernel = _make_ssim_kernel(h, w, h_pad, w_pad, B, BW, P, P_pad, window_size)

    # Scheduling hint + VMEM sizing (raises v5e's 16 MiB default, stays <= 64 MiB
    # so it is also valid on v7x).
    flops = num_blocks * (2 * h_pad * h_pad * 5 * BW          # row-blur matmul
                          + 2 * window_size * 5 * h_pad * BW  # column-blur taps
                          + 25 * h_pad * BW)                  # SSIM elementwise
    bytes_accessed = 4 * (2 * h_pad * P_pad * w_pad + num_blocks * BW
                          + h_pad * h_pad + window_size * 5 * BW)
    tile_bytes = 4 * h_pad * BW
    footprint = (2 * 2 * tile_bytes                               # double-buffered x1/x2
                 + 4 * (h_pad * h_pad + window_size * 5 * BW)     # single-buffered consts
                 + 3 * 4 * 5 * h_pad * BW                         # slab / y / acc
                 + 2 * 4 * BW)                                    # output row
    vmem_limit = int(min(64 * 1024 * 1024, max(32 * 1024 * 1024, 2 * footprint)))

    partial = pl.pallas_call(
        kernel,
        out_shape=jax.ShapeDtypeStruct((num_blocks, BW), jnp.float32),
        grid_spec=pltpu.PrefetchScalarGridSpec(
            num_scalar_prefetch=0,
            grid=(num_blocks,),
            in_specs=[
                pl.BlockSpec((h_pad, BW), lambda i: (0, i)),
                pl.BlockSpec((h_pad, BW), lambda i: (0, i)),
                # Grid-invariant constants: single-buffered.
                pl.BlockSpec((h_pad, h_pad), lambda i: (0, 0),
                             pipeline_mode=pl.Buffered(1)),
                pl.BlockSpec((window_size, 5 * BW), lambda i: (0, 0),
                             pipeline_mode=pl.Buffered(1)),
            ],
            out_specs=pl.BlockSpec((1, BW), lambda i: (i, 0)),
        ),
        compiler_params=pltpu.CompilerParams(
            dimension_semantics=("parallel",),
            vmem_limit_bytes=vmem_limit,
        ),
        cost_estimate=pl.CostEstimate(
            flops=int(flops), transcendentals=0, bytes_accessed=int(bytes_accessed)),
    )(x1_2d, x2_2d, t_h, wmask)

    # TODO(synk): for very large H, add a second (H-tile) grid axis with +/-pad row
    # halos on the Toeplitz panel so per-step VMEM also fits v7x's 64 MiB.
    return jnp.sum(partial) / jnp.float32(P * h * w)


if __name__ == "__main__":
    key = jax.random.PRNGKey(0)
    k1, k2 = jax.random.split(key)
    # Small shapes consistent with the module: batch=2, channels=4, spatial=16.
    img1 = jax.random.uniform(k1, (2, 4, 16, 16), dtype=jnp.float32)
    img2 = jax.random.uniform(k2, (2, 4, 16, 16), dtype=jnp.float32)

    result = jax.jit(ssim)(img1, img2)
    jax.block_until_ready(result)
    print("KERNEL_OK")
</pallas_src>

<mosaic_0001>
module attributes {stable_mosaic.version = 11 : i64} {
  func.func @kernel(%arg0: i32, %arg1: memref<16x128xf32, #tpu.memory_space<vmem>>, %arg2: memref<16x128xf32, #tpu.memory_space<vmem>>, %arg3: memref<16x16xf32, #tpu.memory_space<vmem>>, %arg4: memref<11x640xf32, #tpu.memory_space<vmem>>, %arg5: memref<1x128xf32, #tpu.memory_space<vmem>>) attributes {dimension_semantics = [#tpu.dimension_semantics<parallel>], iteration_bounds = array<i64: 1>, scalar_prefetch = 0 : i64, scratch_operands = 0 : i64, tpu.core_type = #tpu.core_type<tc>, window_params = [{transform_indices = @transform_0, window_bounds = array<i64: 16, 128>}, {transform_indices = @transform_1, window_bounds = array<i64: 16, 128>}, {pipeline_mode = #tpu.pipeline_mode<synchronous>, transform_indices = @transform_2, window_bounds = array<i64: 16, 16>}, {pipeline_mode = #tpu.pipeline_mode<synchronous>, transform_indices = @transform_3, window_bounds = array<i64: 11, 640>}, {transform_indices = @transform_4, window_bounds = array<i64: 1, 128>}]} {
    %c0 = arith.constant 0 : index
    %c0_0 = arith.constant 0 : index
    %0 = vector.load %arg1[%c0, %c0_0] : memref<16x128xf32, #tpu.memory_space<vmem>>, vector<16x128xf32>
    %c0_1 = arith.constant 0 : index
    %c0_2 = arith.constant 0 : index
    %1 = vector.load %arg2[%c0_1, %c0_2] : memref<16x128xf32, #tpu.memory_space<vmem>>, vector<16x128xf32>
    %2 = arith.mulf %0, %0 : vector<16x128xf32>
    %3 = arith.mulf %1, %1 : vector<16x128xf32>
    %4 = arith.mulf %0, %1 : vector<16x128xf32>
    %5 = tpu.concatenate %0, %1, %2, %3, %4 in 1 : vector<16x128xf32>, vector<16x128xf32>, vector<16x128xf32>, vector<16x128xf32>, vector<16x128xf32> -> vector<16x640xf32>
    %c0_3 = arith.constant 0 : index
    %c0_4 = arith.constant 0 : index
    %6 = vector.load %arg3[%c0_3, %c0_4] : memref<16x16xf32, #tpu.memory_space<vmem>>, vector<16x16xf32>
    %cst = arith.constant dense<0.000000e+00> : vector<16x640xf32>
    %7 = tpu.matmul %6, %5, %cst {dimension_numbers = #tpu.dot_dimension_numbers<[1], [0], [0], [1], [0, 0, 1, 1], [], []>, precision = #tpu.contract_precision<fp32>} : vector<16x16xf32>, vector<16x640xf32>, vector<16x640xf32> -> vector<16x640xf32>
    %c5 = arith.constant 5 : index
    %c0_5 = arith.constant 0 : index
    %8 = vector.load %arg4[%c5, %c0_5] : memref<11x640xf32, #tpu.memory_space<vmem>>, vector<1x640xf32>
    %9 = vector.broadcast %8 : vector<1x640xf32> to vector<16x640xf32>
    %10 = arith.mulf %7, %9 : vector<16x640xf32>
    %c5_i32 = arith.constant 5 : i32
    %11 = tpu.dynamic_rotate %7 by %c5_i32 dim 1 : vector<16x640xf32>, i32 -> vector<16x640xf32>
    %c0_6 = arith.constant 0 : index
    %c0_7 = arith.constant 0 : index
    %12 = vector.load %arg4[%c0_6, %c0_7] : memref<11x640xf32, #tpu.memory_space<vmem>>, vector<1x640xf32>
    %13 = vector.broadcast %12 : vector<1x640xf32> to vector<16x640xf32>
    %14 = arith.mulf %11, %13 : vector<16x640xf32>
    %15 = arith.addf %10, %14 : vector<16x640xf32>
    %c4_i32 = arith.constant 4 : i32
    %16 = tpu.dynamic_rotate %7 by %c4_i32 dim 1 : vector<16x640xf32>, i32 -> vector<16x640xf32>
    %c1 = arith.constant 1 : index
    %c0_8 = arith.constant 0 : index
    %17 = vector.load %arg4[%c1, %c0_8] : memref<11x640xf32, #tpu.memory_space<vmem>>, vector<1x640xf32>
    %18 = vector.broadcast %17 : vector<1x640xf32> to vector<16x640xf32>
    %19 = arith.mulf %16, %18 : vector<16x640xf32>
    %20 = arith.addf %15, %19 : vector<16x640xf32>
    %c3_i32 = arith.constant 3 : i32
    %21 = tpu.dynamic_rotate %7 by %c3_i32 dim 1 : vector<16x640xf32>, i32 -> vector<16x640xf32>
    %c2 = arith.constant 2 : index
    %c0_9 = arith.constant 0 : index
    %22 = vector.load %arg4[%c2, %c0_9] : memref<11x640xf32, #tpu.memory_space<vmem>>, vector<1x640xf32>
    %23 = vector.broadcast %22 : vector<1x640xf32> to vector<16x640xf32>
    %24 = arith.mulf %21, %23 : vector<16x640xf32>
    %25 = arith.addf %20, %24 : vector<16x640xf32>
    %c2_i32 = arith.constant 2 : i32
    %26 = tpu.dynamic_rotate %7 by %c2_i32 dim 1 : vector<16x640xf32>, i32 -> vector<16x640xf32>
    %c3 = arith.constant 3 : index
    %c0_10 = arith.constant 0 : index
    %27 = vector.load %arg4[%c3, %c0_10] : memref<11x640xf32, #tpu.memory_space<vmem>>, vector<1x640xf32>
    %28 = vector.broadcast %27 : vector<1x640xf32> to vector<16x640xf32>
    %29 = arith.mulf %26, %28 : vector<16x640xf32>
    %30 = arith.addf %25, %29 : vector<16x640xf32>
    %c1_i32 = arith.constant 1 : i32
    %31 = tpu.dynamic_rotate %7 by %c1_i32 dim 1 : vector<16x640xf32>, i32 -> vector<16x640xf32>
    %c4 = arith.constant 4 : index
    %c0_11 = arith.constant 0 : index
    %32 = vector.load %arg4[%c4, %c0_11] : memref<11x640xf32, #tpu.memory_space<vmem>>, vector<1x640xf32>
    %33 = vector.broadcast %32 : vector<1x640xf32> to vector<16x640xf32>
    %34 = arith.mulf %31, %33 : vector<16x640xf32>
    %35 = arith.addf %30, %34 : vector<16x640xf32>
    %c639_i32 = arith.constant 639 : i32
    %36 = tpu.dynamic_rotate %7 by %c639_i32 dim 1 : vector<16x640xf32>, i32 -> vector<16x640xf32>
    %c6 = arith.constant 6 : index
    %c0_12 = arith.constant 0 : index
    %37 = vector.load %arg4[%c6, %c0_12] : memref<11x640xf32, #tpu.memory_space<vmem>>, vector<1x640xf32>
    %38 = vector.broadcast %37 : vector<1x640xf32> to vector<16x640xf32>
    %39 = arith.mulf %36, %38 : vector<16x640xf32>
    %40 = arith.addf %35, %39 : vector<16x640xf32>
    %c638_i32 = arith.constant 638 : i32
    %41 = tpu.dynamic_rotate %7 by %c638_i32 dim 1 : vector<16x640xf32>, i32 -> vector<16x640xf32>
    %c7 = arith.constant 7 : index
    %c0_13 = arith.constant 0 : index
    %42 = vector.load %arg4[%c7, %c0_13] : memref<11x640xf32, #tpu.memory_space<vmem>>, vector<1x640xf32>
    %43 = vector.broadcast %42 : vector<1x640xf32> to vector<16x640xf32>
    %44 = arith.mulf %41, %43 : vector<16x640xf32>
    %45 = arith.addf %40, %44 : vector<16x640xf32>
    %c637_i32 = arith.constant 637 : i32
    %46 = tpu.dynamic_rotate %7 by %c637_i32 dim 1 : vector<16x640xf32>, i32 -> vector<16x640xf32>
    %c8 = arith.constant 8 : index
    %c0_14 = arith.constant 0 : index
    %47 = vector.load %arg4[%c8, %c0_14] : memref<11x640xf32, #tpu.memory_space<vmem>>, vector<1x640xf32>
    %48 = vector.broadcast %47 : vector<1x640xf32> to vector<16x640xf32>
    %49 = arith.mulf %46, %48 : vector<16x640xf32>
    %50 = arith.addf %45, %49 : vector<16x640xf32>
    %c636_i32 = arith.constant 636 : i32
    %51 = tpu.dynamic_rotate %7 by %c636_i32 dim 1 : vector<16x640xf32>, i32 -> vector<16x640xf32>
    %c9 = arith.constant 9 : index
    %c0_15 = arith.constant 0 : index
    %52 = vector.load %arg4[%c9, %c0_15] : memref<11x640xf32, #tpu.memory_space<vmem>>, vector<1x640xf32>
    %53 = vector.broadcast %52 : vector<1x640xf32> to vector<16x640xf32>
    %54 = arith.mulf %51, %53 : vector<16x640xf32>
    %55 = arith.addf %50, %54 : vector<16x640xf32>
    %c635_i32 = arith.constant 635 : i32
    %56 = tpu.dynamic_rotate %7 by %c635_i32 dim 1 : vector<16x640xf32>, i32 -> vector<16x640xf32>
    %c10 = arith.constant 10 : index
    %c0_16 = arith.constant 0 : index
    %57 = vector.load %arg4[%c10, %c0_16] : memref<11x640xf32, #tpu.memory_space<vmem>>, vector<1x640xf32>
    %58 = vector.broadcast %57 : vector<1x640xf32> to vector<16x640xf32>
    %59 = arith.mulf %56, %58 : vector<16x640xf32>
    %60 = arith.addf %55, %59 : vector<16x640xf32>
    %61 = vector.extract_strided_slice %60 {offsets = [0, 0], sizes = [16, 128], strides = [1, 1]} : vector<16x640xf32> to vector<16x128xf32>
    %62 = vector.extract_strided_slice %60 {offsets = [0, 128], sizes = [16, 128], strides = [1, 1]} : vector<16x640xf32> to vector<16x128xf32>
    %63 = vector.extract_strided_slice %60 {offsets = [0, 256], sizes = [16, 128], strides = [1, 1]} : vector<16x640xf32> to vector<16x128xf32>
    %64 = vector.extract_strided_slice %60 {offsets = [0, 384], sizes = [16, 128], strides = [1, 1]} : vector<16x640xf32> to vector<16x128xf32>
    %65 = vector.extract_strided_slice %60 {offsets = [0, 512], sizes = [16, 128], strides = [1, 1]} : vector<16x640xf32> to vector<16x128xf32>
    %66 = arith.mulf %61, %61 : vector<16x128xf32>
    %67 = arith.mulf %62, %62 : vector<16x128xf32>
    %68 = arith.mulf %61, %62 : vector<16x128xf32>
    %69 = arith.subf %63, %66 : vector<16x128xf32>
    %70 = arith.subf %64, %67 : vector<16x128xf32>
    %71 = arith.subf %65, %68 : vector<16x128xf32>
    %cst_17 = arith.constant 2.000000e+00 : f32
    %72 = vector.broadcast %cst_17 : f32 to vector<16x128xf32>
    %73 = arith.mulf %72, %68 : vector<16x128xf32>
    %cst_18 = arith.constant 9.99999974E-5 : f32
    %74 = vector.broadcast %cst_18 : f32 to vector<16x128xf32>
    %75 = arith.addf %73, %74 : vector<16x128xf32>
    %cst_19 = arith.constant 2.000000e+00 : f32
    %76 = vector.broadcast %cst_19 : f32 to vector<16x128xf32>
    %77 = arith.mulf %76, %71 : vector<16x128xf32>
    %cst_20 = arith.constant 8.99999984E-4 : f32
    %78 = vector.broadcast %cst_20 : f32 to vector<16x128xf32>
    %79 = arith.addf %77, %78 : vector<16x128xf32>
    %80 = arith.mulf %75, %79 : vector<16x128xf32>
    %81 = arith.addf %66, %67 : vector<16x128xf32>
    %cst_21 = arith.constant 9.99999974E-5 : f32
    %82 = vector.broadcast %cst_21 : f32 to vector<16x128xf32>
    %83 = arith.addf %81, %82 : vector<16x128xf32>
    %84 = arith.addf %69, %70 : vector<16x128xf32>
    %cst_22 = arith.constant 8.99999984E-4 : f32
    %85 = vector.broadcast %cst_22 : f32 to vector<16x128xf32>
    %86 = arith.addf %84, %85 : vector<16x128xf32>
    %87 = arith.mulf %83, %86 : vector<16x128xf32>
    %88 = arith.divf %80, %87 : vector<16x128xf32>
    %cst_23 = arith.constant dense<0.000000e+00> : vector<128xf32>
    %89 = vector.multi_reduction <add>, %88, %cst_23 [0] : vector<16x128xf32> to vector<128xf32>
    %90 = vector.shape_cast %89 : vector<128xf32> to vector<1x128xf32>
    %c0_24 = arith.constant 0 : index
    %c0_25 = arith.constant 0 : index
    %91 = vector.load %arg5[%c0_24, %c0_25] : memref<1x128xf32, #tpu.memory_space<vmem>>, vector<1x128xf32>
    tpu.vector_store %arg5[%c0_24, %c0_25], %90 {strides = array<i32>} : memref<1x128xf32, #tpu.memory_space<vmem>>, vector<1x128xf32>,
    return
  }
  func.func @transform_0(%arg0: i32) -> (i32, i32) {
    %c0_i32 = arith.constant 0 : i32
    %c0_i32_0 = arith.constant 0 : i32
    return %c0_i32, %arg0 : i32, i32
  }
  func.func @transform_1(%arg0: i32) -> (i32, i32) {
    %c0_i32 = arith.constant 0 : i32
    %c0_i32_0 = arith.constant 0 : i32
    return %c0_i32, %arg0 : i32, i32
  }
  func.func @transform_2(%arg0: i32) -> (i32, i32) {
    %c0_i32 = arith.constant 0 : i32
    %c0_i32_0 = arith.constant 0 : i32
    %c0_i32_1 = arith.constant 0 : i32
    return %c0_i32, %c0_i32_0 : i32, i32
  }
  func.func @transform_3(%arg0: i32) -> (i32, i32) {
    %c0_i32 = arith.constant 0 : i32
    %c0_i32_0 = arith.constant 0 : i32
    %c0_i32_1 = arith.constant 0 : i32
    return %c0_i32, %c0_i32_0 : i32, i32
  }
  func.func @transform_4(%arg0: i32) -> (i32, i32) {
    %c0_i32 = arith.constant 0 : i32
    %c0_i32_0 = arith.constant 0 : i32
    return %arg0, %c0_i32 : i32, i32
  }
}

</mosaic_0001>

<bundles_post_ra>
// kernel: squeeze.2
= control target key start
LH: loop header
LB: loop body
LE: loop exit
PB: predicated region body
PF: predicated region fallthrough
CT: control target
= control target key end

     0   :  { %vm4_vm0 = vcmask 1047556   ;;  %s209_s14 = smov 96   ;;  %s210_s19 = smov 112   ;;  %vm6_vm1 = vcmask 130048   ;;  %vm25_vm2 = vcmask 1048448   ;;  %vm46_vm3 = vcmask 917248   ;;  %s388_s0 = inlined_call_operand.vmem [shape: f32[1,16,8,16], index: 0, kind: input, shape index: {}]   ;;  %s389_s1 = inlined_call_operand.vmem [shape: f32[16,128], index: 1, kind: output, shape index: {}]  }
   0x1   :  { %v172_v0 = vld [vmem:[%s388_s0 + $0x6] ss:$8 sm:$0xf]   ;;  %v167_v3 = vld [vmem:[%s388_s0 + $0x7] ss:$8 sm:$0xf]  }
   0x2   :  { %v173_v1 = vld [vmem:[%s388_s0 + $0x6] ss:$8 sm:$0xf0]   ;;  %v168_v4 = vld [vmem:[%s388_s0 + $0x7] ss:$8 sm:$0xf0]  }
   0x3   :  { %v43_v2 = vsel %vm4_vm0, %v173_v1, %v172_v0  ;;  %v22_v5 = vsel %vm4_vm0, %v168_v4, %v167_v3  ;;  %v174_v6 = vld [vmem:[%s388_s0 + $0x46] ss:$8 sm:$0xf]   ;;  %v169_v9 = vld [vmem:[%s388_s0 + $0x47] ss:$8 sm:$0xf]  }
   0x4   :  { %44 = vrot.lane.b32.xlu1 %v43_v2, %s209_s14  ;;  %v175_v7 = vld [vmem:[%s388_s0 + $0x46] ss:$8 sm:$0xf0]   ;;  %23 = vrot.lane.b32.xlu0 %v22_v5, %s210_s19  ;;  %v170_v10 = vld [vmem:[%s388_s0 + $0x47] ss:$8 sm:$0xf0]  }
   0x5   :  { %v53_v8 = vsel %vm4_vm0, %v175_v7, %v174_v6  ;;  %v32_v11 = vsel %vm4_vm0, %v170_v10, %v169_v9  ;;  %v179_v12 = vld [vmem:[%s388_s0 + $0x45] ss:$8 sm:$0xf]   ;;  %v184_v18 = vld [vmem:[%s388_s0 + $0x44] ss:$8 sm:$0xf]  }
   0x6   :  { %v180_v13 = vld [vmem:[%s388_s0 + $0x45] ss:$8 sm:$0xf0]   ;;  %v185_v19 = vld [vmem:[%s388_s0 + $0x44] ss:$8 sm:$0xf0]  }
   0x7   :  { %v177_v14 = vld [vmem:[%s388_s0 + $0x5] ss:$8 sm:$0xf]   ;;  %v74_v16 = vsel %vm4_vm0, %v180_v13, %v179_v12  ;;  %v182_v20 = vld [vmem:[%s388_s0 + $0x4] ss:$8 sm:$0xf]   ;;  %v95_v22 = vsel %vm4_vm0, %v185_v19, %v184_v18 }
   0x8   :  { %54 = vrot.lane.b32.xlu1 %v53_v8, %s209_s14  ;;  %v178_v15 = vld [vmem:[%s388_s0 + $0x5] ss:$8 sm:$0xf0]   ;;  %33 = vrot.lane.b32.xlu0 %v32_v11, %s210_s19  ;;  %v183_v21 = vld [vmem:[%s388_s0 + $0x4] ss:$8 sm:$0xf0]  }
   0x9   :  { %v64_v17 = vsel %vm4_vm0, %v178_v15, %v177_v14  ;;  %s211_s11 = smov 80   ;;  %v85_v23 = vsel %vm4_vm0, %v183_v21, %v182_v20  ;;  %v189_v24 = vld [vmem:[%s388_s0 + $0x43] ss:$8 sm:$0xf]   ;;  %s212_s20 = smov 64   ;;  %vm67_vm4 = vcmask 786048  }
   0xa   :  { %v190_v25 = vld [vmem:[%s388_s0 + $0x43] ss:$8 sm:$0xf0]   ;;  %v194_v28 = vld [vmem:[%s388_s0 + $0x42] ss:$8 sm:$0xf]  }
   0xb   :  { %v187_v26 = vld [vmem:[%s388_s0 + $0x3] ss:$8 sm:$0xf]   ;;  %v195_v29 = vld [vmem:[%s388_s0 + $0x42] ss:$8 sm:$0xf0]   ;;  %v116_v30 = vsel %vm4_vm0, %v190_v25, %v189_v24 }
   0xc   :  { %75 = vrot.lane.b32.xlu1 %v74_v16, %s211_s11  ;;  %65 = vrot.lane.b32.xlu0 %v64_v17, %s211_s11  ;;  %v188_v27 = vld [vmem:[%s388_s0 + $0x3] ss:$8 sm:$0xf0]   ;;  %v192_v31 = vld [vmem:[%s388_s0 + $0x2] ss:$8 sm:$0xf]   ;;  %v137_v40 = vsel %vm4_vm0, %v195_v29, %v194_v28 }
   0xd   :  { %v2_v32 = vld [vmem:[%s388_s0] ss:$8 sm:$0xf]   ;;  %v106_v33 = vsel %vm4_vm0, %v188_v27, %v187_v26  ;;  %v193_v36 = vld [vmem:[%s388_s0 + $0x2] ss:$8 sm:$0xf0]  }
   0xe   :  { %v3_v34 = vld [vmem:[%s388_s0] ss:$8 sm:$0xf0]   ;;  %s213_s8 = smov 48   ;;  %v127_v41 = vsel %vm4_vm0, %v193_v36, %v192_v31  ;;  %s215_s21 = smov 16   ;;  %vm88_vm5 = vcmask 654848  }
   0xf   :  { %v164_v35 = vld [vmem:[%s388_s0 + $0x40] ss:$8 sm:$0xf]   ;;  %v5_v37 = vsel %vm4_vm0, %v3_v34, %v2_v32  ;;  %v199_v42 = vld [vmem:[%s388_s0 + $0x41] ss:$8 sm:$0xf]  }
  0x10   :  { %96 = vrot.lane.b32.xlu1 %v95_v22, %s212_s20  ;;  %86 = vrot.lane.b32.xlu0 %v85_v23, %s212_s20  ;;  %v165_v38 = vld [vmem:[%s388_s0 + $0x40] ss:$8 sm:$0xf0]   ;;  %7 = vst.msk [vmem:[%s389_s1] sm:$0xff] %vm6_vm1, %v5_v37   ;;  %vm109_vm6 = vcmask 523648   ;;  %vm130_vm7 = vcmask 392448  }
  0x11   :  { %v13_v39 = vsel %vm4_vm0, %v165_v38, %v164_v35  ;;  %v200_v43 = vld [vmem:[%s388_s0 + $0x41] ss:$8 sm:$0xf0]   ;;  %vm151_vm8 = vcmask 261248  }
  0x12   :  { %166 = vst.msk [vmem:[%s389_s1 + $0x8] sm:$0xff] %vm6_vm1, %v13_v39   ;;  %v197_v44 = vld [vmem:[%s388_s0 + $0x1] ss:$8 sm:$0xf]   ;;  %v158_v46 = vsel %vm4_vm0, %v200_v43, %v199_v42 }
  0x13   :  { %v198_v45 = vld [vmem:[%s388_s0 + $0x1] ss:$8 sm:$0xf0]   ;;  %s214_s0 = smov 32  }
  0x14   :  { %117 = vrot.lane.b32.xlu1 %v116_v30, %s213_s8  ;;  %107 = vrot.lane.b32.xlu0 %v106_v33, %s213_s8  ;;  %v148_v47 = vsel %vm4_vm0, %v198_v45, %v197_v44 }
  0x18   :  { %138 = vrot.lane.b32.xlu1 %v137_v40, %s214_s0  ;;  %128 = vrot.lane.b32.xlu0 %v127_v41, %s214_s0 }
  0x1c   :  { %159 = vrot.lane.b32.xlu1 %v158_v46, %s215_s21  ;;  %149 = vrot.lane.b32.xlu0 %v148_v47, %s215_s21 }
  0x76   :  { %v45_v48 = vpop.permute.xlu1 %44   ;;  %v24_v49 = vpop.permute.xlu0 %23  }
  0x77   :  { %26 = vst.msk [vmem:[%s389_s1] sm:$0xff] %vm25_vm2, %v24_v49  }
  0x78   :  { %47 = vst.msk [vmem:[%s389_s1] sm:$0xff] %vm46_vm3, %v45_v48  }
  0x7a   :  { %v55_v50 = vpop.permute.xlu1 %54   ;;  %v34_v51 = vpop.permute.xlu0 %33  }
  0x7b   :  { %171 = vst.msk [vmem:[%s389_s1 + $0x8] sm:$0xff] %vm25_vm2, %v34_v51  }
  0x7c   :  { %176 = vst.msk [vmem:[%s389_s1 + $0x8] sm:$0xff] %vm46_vm3, %v55_v50  }
  0x7e   :  { %v76_v52 = vpop.permute.xlu1 %75   ;;  %v66_v53 = vpop.permute.xlu0 %65  }
  0x7f   :  { %181 = vst.msk [vmem:[%s389_s1 + $0x8] sm:$0xff] %vm67_vm4, %v76_v52   ;;  %68 = vst.msk [vmem:[%s389_s1] sm:$0xff] %vm67_vm4, %v66_v53  }
  0x82   :  { %v97_v54 = vpop.permute.xlu1 %96   ;;  %v87_v55 = vpop.permute.xlu0 %86  }
  0x83   :  { %186 = vst.msk [vmem:[%s389_s1 + $0x8] sm:$0xff] %vm88_vm5, %v97_v54   ;;  %89 = vst.msk [vmem:[%s389_s1] sm:$0xff] %vm88_vm5, %v87_v55  }
  0x86   :  { %v118_v56 = vpop.permute.xlu1 %117   ;;  %v108_v57 = vpop.permute.xlu0 %107  }
  0x87   :  { %191 = vst.msk [vmem:[%s389_s1 + $0x8] sm:$0xff] %vm109_vm6, %v118_v56   ;;  %110 = vst.msk [vmem:[%s389_s1] sm:$0xff] %vm109_vm6, %v108_v57  }
  0x8a   :  { %v139_v58 = vpop.permute.xlu1 %138   ;;  %v129_v59 = vpop.permute.xlu0 %128  }
  0x8b   :  { %196 = vst.msk [vmem:[%s389_s1 + $0x8] sm:$0xff] %vm130_vm7, %v139_v58   ;;  %131 = vst.msk [vmem:[%s389_s1] sm:$0xff] %vm130_vm7, %v129_v59  }
  0x8e   :  { %v160_v60 = vpop.permute.xlu1 %159   ;;  %v150_v61 = vpop.permute.xlu0 %149  }
  0x8f   :  { %201 = vst.msk [vmem:[%s389_s1 + $0x8] sm:$0xff] %vm151_vm8, %v160_v60   ;;  %152 = vst.msk [vmem:[%s389_s1] sm:$0xff] %vm151_vm8, %v150_v61  }

// kernel: ssim.1
= control target key start
LH: loop header
LB: loop body
LE: loop exit
PB: predicated region body
PF: predicated region fallthrough
CT: control target
= control target key end

     0   :  { %vm29_vm0 = vcmask 130048   ;;  %v2742_v3 = vmov 0.0   ;;  %s2745_s26 = smov 3   ;;  %s2746_s27 = smov 2   ;;  %s4153_s1 = inlined_call_operand.vmem [shape: f32[16,128], index: 1, kind: input, shape index: {}]   ;;  %s4154_s0 = inlined_call_operand.vmem [shape: f32[16,128], index: 0, kind: input, shape index: {}]   ;;  %s4155_s2 = inlined_call_operand.vmem [shape: f32[16,16], index: 2, kind: input, shape index: {}]   ;;  %s4156_s3 = inlined_call_operand.vmem [shape: f32[11,640], index: 3, kind: input, shape index: {}]   ;;  %s4157_s4 = inlined_call_operand.vmem [shape: f32[1,128], index: 4, kind: output, shape index: {}]  }
   0x1   :  { %v2781_v0 = vld [vmem:[%s4153_s1] sm:$0xff]  ;;  %v2786_v1 = vld [vmem:[%s4153_s1 + $0x8] sm:$0xff]  ;;  %211 = vmatprep.mubr.f32.mxu0 %v2742_v3  ;;  %104 = vmatprep.mubr.f32.mxu1 %v2742_v3  ;;  %s2747_s28 = smov 1   ;;  %s2748_s29 = smov 127  }
   0x2   :  { %v2791_v2 = vld [vmem:[%s4154_s0] sm:$0xff]  ;;  %v36_v4 = vand.u32 4294901760, %v2781_v0  ;;  %v40_v5 = vand.u32 4294901760, %v2786_v1  ;;  %v2800_v6 = vld [vmem:[%s4154_s0 + $0x8] sm:$0xff]  ;;  %v23_v38 = vmul.f32 %v2781_v0, %v2781_v0  ;;  %v24_v39 = vmul.f32 %v2786_v1, %v2786_v1  ;;  %s2743_s0 = smov 5   ;;  %s2749_s30 = smov 126  }
   0x3   :  { %v38_v7 = vand.u32 4294901760, %v2791_v2  ;;  %v27_v8 = vld [vmem:[%s4155_s2] sm:$0xff]  ;;  %v28_v9 = vld [vmem:[%s4155_s2 + $0x8] sm:$0xff]  ;;  %v42_v10 = vand.u32 4294901760, %v2800_v6  ;;  %v21_v42 = vmul.f32 %v2791_v2, %v2791_v2  ;;  %v22_v43 = vmul.f32 %v2800_v6, %v2800_v6  ;;  %s2744_s2 = smov 4   ;;  %s2750_s5 = smov 125  }
   0x4   :  { %v31_v11 = vsel %vm29_vm0, %v27_v8, 0  ;;  %v2812_v12 = vsub.f32 %v2781_v0, %v36_v4  ;;  %v2815_v13 = vsub.f32 %v2786_v1, %v40_v5  ;;  %v2825_v17 = vpack.c.bf16 %v40_v5, %v36_v4  ;;  %s2751_s6 = smov 124   ;;  %s2752_s7 = smov 123  }
   0x5   :  { %v2818_v14 = vsub.f32 %v2791_v2, %v38_v7  ;;  %v2821_v15 = vsub.f32 %v2800_v6, %v42_v10  ;;  %v2823_v16 = vand.u32 4294901760, %v31_v11  ;;  %v34_v18 = vsel %vm29_vm0, %v28_v9, 0 }
   0x6   :  { %v129_v19 = vand.u32 4294901760, %v2812_v12  ;;  %v141_v20 = vand.u32 4294901760, %v2815_v13  ;;  %v2835_v24 = vpack.c.bf16 %v42_v10, %v38_v7  ;;  %2604 = vmatprep.subr.bf16.mxu1 %v2825_v17  ;;  %v2847_v28 = vand.u32 4294901760, %v34_v18 }
   0x7   :  { %v135_v21 = vand.u32 4294901760, %v2818_v14  ;;  %v147_v22 = vand.u32 4294901760, %v2821_v15  ;;  %v2833_v23 = vsub.f32 %v31_v11, %v2823_v16  ;;  %v2611_v30 = vpack.c.bf16 %v2815_v13, %v2812_v12 }
   0x8   :  { %v130_v25 = vsub.f32 %v2812_v12, %v129_v19  ;;  %v142_v26 = vsub.f32 %v2815_v13, %v141_v20  ;;  %2606 = vmatpush1.bf16.msra.mxu1 %v2835_v24  ;;  %v2859_v35 = vsub.f32 %v34_v18, %v2847_v28  ;;  %v576_v46 = vand.u32 4294901760, %v23_v38 }
   0x9   :  { %v136_v27 = vsub.f32 %v2818_v14, %v135_v21  ;;  %v148_v29 = vsub.f32 %v2821_v15, %v147_v22  ;;  %v2856_v31 = vand.u32 4294901760, %v2833_v23  ;;  %v580_v47 = vand.u32 4294901760, %v24_v39 }
   0xa   :  { %v131_v32 = vand.u32 4294901760, %v130_v25  ;;  %v143_v33 = vand.u32 4294901760, %v142_v26  ;;  %v2868_v41 = vand.u32 4294901760, %v2859_v35  ;;  %v2613_v48 = vpack.c.bf16 %v2821_v15, %v2818_v14 }
   0xb   :  { %v137_v34 = vand.u32 4294901760, %v136_v27  ;;  %v149_v36 = vand.u32 4294901760, %v148_v29  ;;  %v108_v37 = vsub.f32 %v2833_v23, %v2856_v31  ;;  %v578_v50 = vand.u32 4294901760, %v21_v42 }
   0xc   :  { %v2607_v40 = vpack.c.bf16 %v143_v33, %v131_v32  ;;  %v119_v49 = vsub.f32 %v2859_v35, %v2868_v41  ;;  %v582_v51 = vand.u32 4294901760, %v22_v43  ;;  %v2881_v52 = vpack.c.bf16 %v580_v47, %v576_v46 }
   0xd   :  { %v2609_v44 = vpack.c.bf16 %v149_v36, %v137_v34  ;;  %v2874_v45 = vand.u32 4294901760, %v108_v37  ;;  %v2883_v53 = vsub.f32 %v23_v38, %v576_v46  ;;  %v2885_v54 = vsub.f32 %v24_v39, %v580_v47 }
   0xe   :  { %2608 = vmatprep.subr.bf16.mxu0 %v2607_v40  ;;  %2675 = vmatprep.subr.bf16.mxu1 %v2607_v40  ;;  %v2888_v55 = vand.u32 4294901760, %v119_v49  ;;  %v2890_v56 = vsub.f32 %v21_v42, %v578_v50  ;;  %v2892_v57 = vsub.f32 %v22_v43, %v582_v51  ;;  %v25_v9 = vmul.f32 %v2781_v0, %v2791_v2 }
   0xf   :  { %2610 = vmatpush1.bf16.msra.mxu0 %v2609_v44  ;;  %110 = vmatmul.mubr.f32.vlgmr.msra.gmra.mrb[0].mxu1 %v2874_v45  ;;  %v669_v58 = vand.u32 4294901760, %v2883_v53  ;;  %v681_v59 = vand.u32 4294901760, %v2885_v54  ;;  %v26_v10 = vmul.f32 %v2786_v1, %v2800_v6  ;;  %v2619_v11 = vpack.c.bf16 %v141_v20, %v129_v19 }
  0x10   :  { %2612 = vmatprep.subr.bf16.mxu0 %v2611_v30  ;;  %115 = vmatprep.mubr.f32.mxu1 %v2742_v3  ;;  %v675_v60 = vand.u32 4294901760, %v2890_v56  ;;  %v687_v61 = vand.u32 4294901760, %v2892_v57  ;;  %v2924_v18 = vpack.c.bf16 %v582_v51, %v578_v50  ;;  %v1117_v0 = vand.u32 4294901760, %v25_v9 }
  0x11   :  { %2676 = vmatpush1.bf16.msra.mxu1 %v2609_v44  ;;  %v670_v62 = vsub.f32 %v2883_v53, %v669_v58  ;;  %v682_v63 = vsub.f32 %v2885_v54, %v681_v59  ;;  %v1120_v2 = vand.u32 4294901760, %v26_v10  ;;  %v2635_v6 = vpack.c.bf16 %v2885_v54, %v2883_v53 }
  0x12   :  { %213 = vmatmul.mubr.f32.vlgmr.msra.gmra.mrb[0].mxu0 %v2823_v16  ;;  %2628 = vmatprep.subr.bf16.mxu1 %v2881_v52  ;;  %v676_v4 = vsub.f32 %v2890_v56, %v675_v60  ;;  %v688_v5 = vsub.f32 %v2892_v57, %v687_v61  ;;  %v2621_v12 = vpack.c.bf16 %v147_v22, %v135_v21 }
  0x13   :  { %2614 = vmatpush1.bf16.msra.mxu0 %v2613_v48  ;;  %298 = vmatprep.mubr.f32.mxu0 %v2742_v3  ;;  %v671_v7 = vand.u32 4294901760, %v670_v62  ;;  %v683_v8 = vand.u32 4294901760, %v682_v63  ;;  %v2941_v13 = vsub.f32 %v25_v9, %v1117_v0  ;;  %v2943_v19 = vsub.f32 %v26_v10, %v1120_v2  ;;  %v1692_v9 = vld [vmem:[%s4156_s3] ss:$8 sm:$0x10] }
  0x14   :  { %2616 = vmatprep.subr.bf16.mxu0 %v2825_v17  ;;  %121 = vmatmul.mubr.f32.gmra.mrb[2].mxu1 %v2888_v55  ;;  %v677_v25 = vand.u32 4294901760, %v676_v4  ;;  %v689_v26 = vand.u32 4294901760, %v688_v5  ;;  %v2637_v20 = vpack.c.bf16 %v2892_v57, %v2890_v56  ;;  %v2958_v21 = vpack.c.bf16 %v1120_v2, %v1117_v0  ;;  %v2517_v4 = vld [vmem:[%s4156_s3 + $0x5] ss:$8 sm:$0xf] }
  0x15   :  { %218 = vmatprep.mubr.f32.mxu1 %v2742_v3  ;;  %v2631_v27 = vpack.c.bf16 %v683_v8, %v671_v7  ;;  %v1206_v14 = vand.u32 4294901760, %v2941_v13  ;;  %v1213_v15 = vand.u32 4294901760, %v2943_v19  ;;  %v2643_v32 = vpack.c.bf16 %v681_v59, %v669_v58  ;;  %v1691_v8 = vld [vmem:[%s4156_s3] ss:$8 sm:$0xf] }
  0x16   :  { %v2633_v1 = vpack.c.bf16 %v689_v26, %v677_v25  ;;  %v2645_v33 = vpack.c.bf16 %v687_v61, %v675_v60  ;;  %v2659_v34 = vpack.c.bf16 %v2943_v19, %v2941_v13  ;;  %v1623_v61 = vlaneseq  ;;  %v2519_v25 = vld [vmem:[%s4156_s3 + $0x1] ss:$8 sm:$0xf] }
  0x17   :  { %v1214_v22 = vsub.f32 %v2943_v19, %v1213_v15  ;;  %v2667_v36 = vpack.c.bf16 %v1213_v15, %v1206_v14  ;;  %v2520_v26 = vld [vmem:[%s4156_s3 + $0x1] ss:$8 sm:$0x10]  ;;  %v2522_v19 = vld [vmem:[%s4156_s3 + $0x2] ss:$8 sm:$0x10] }
  0x18   :  { %v3215_v5 = vshrl.u32 %v1623_v61, 7 }
  0x19   :  { %v1215_v30 = vand.u32 4294901760, %v1214_v22 }
  0x1a   :  { %301 = vmatmul.mubr.f32.vlgmr.msra.gmra.mrb[0].mxu0 %v2833_v23 }
  0x1b   :  { %2618 = vmatpush1.bf16.msra.mxu0 %v2835_v24  ;;  %306 = vmatprep.mubr.f32.mxu0 %v2742_v3 }
  0x1c   :  { %2620 = vmatprep.subr.bf16.mxu0 %v2619_v11  ;;  %220 = vmatmul.mubr.f32.vlgmr.msra.gmra.mrb[2].mxu1 %v2847_v28  ;;  %v2518_v11 = vld [vmem:[%s4156_s3 + $0x5] ss:$8 sm:$0x10] }
  0x1d   :  { %2630 = vmatpush1.bf16.msra.mxu1 %v2924_v18  ;;  %644 = vmatprep.mubr.f32.mxu1 %v2742_v3  ;;  %v3246_v2 = vor.u32 %v2518_v11, %v2517_v4 }
  0x1e   :  { %309 = vmatmul.mubr.f32.gmra.mrb[2].mxu0 %v2859_v35  ;;  %2632 = vmatprep.subr.bf16.mxu1 %v2631_v27  ;;  %v3242_v27 = vor.u32 %v1692_v9, %v1691_v8 }
  0x1f   :  { %383 = vmatprep.mubr.f32.mxu0 %v2742_v3 }
  0x20   :  { %650 = vmatmul.mubr.f32.vlgmr.msra.gmra.mrb[4].mxu1 %v2874_v45 }
  0x21   :  { %655 = vmatprep.mubr.f32.mxu1 %v2742_v3  ;;  %2634 = vmatpush1.bf16.msra.mxu1 %v2633_v1  ;;  %v3249_v1 = vsub.s32 1, %v3215_v5 }
  0x22   :  { %387 = vmatmul.mubr.f32.vlgmr.msra.gmra.mrb[0].mxu0 %v2856_v31  ;;  %2636 = vmatprep.subr.bf16.mxu1 %v2635_v6 }
  0x23   :  { %2622 = vmatpush1.bf16.msra.mxu0 %v2621_v12  ;;  %392 = vmatprep.mubr.f32.mxu0 %v2742_v3  ;;  %v3256_v12 = vor.u32 %v2520_v26, %v2519_v25 }
  0x24   :  { %2624 = vmatprep.subr.bf16.mxu0 %v2825_v17  ;;  %661 = vmatmul.mubr.f32.gmra.mrb[6].mxu1 %v2888_v55  ;;  %v1207_v17 = vsub.f32 %v2941_v13, %v1206_v14  ;;  %v2521_v13 = vld [vmem:[%s4156_s3 + $0x2] ss:$8 sm:$0xf]  ;;  %v3268_v14 = vrot.slane %v3242_v27, %v3249_v1 }
  0x25   :  { %751 = vmatprep.mubr.f32.mxu1 %v2742_v3  ;;  %v3287_v22 = vrot.slane %v3256_v12, %v3249_v1 }
  0x26   :  { %396 = vmatmul.mubr.f32.gmra.mrb[2].mxu0 %v2868_v41  ;;  %v1208_v29 = vand.u32 4294901760, %v1207_v17 }
  0x27   :  { %478 = vmatprep.mubr.f32.mxu0 %v2742_v3 }
  0x28   :  { %753 = vmatmul.mubr.f32.vlgmr.msra.gmra.mrb[4].mxu1 %v2823_v16 }
  0x29   :  { %758 = vmatprep.mubr.f32.mxu1 %v2742_v3  ;;  %2638 = vmatpush1.bf16.msra.mxu1 %v2637_v20  ;;  %v3274_v20 = vrot.slane %v3246_v2, %v3249_v1 }
  0x2a   :  { %480 = vmatmul.mubr.f32.vlgmr.msra.gmra.mrb[0].mxu0 %v2823_v16  ;;  %2640 = vmatprep.subr.bf16.mxu1 %v2881_v52 }
  0x2b   :  { %2626 = vmatpush1.bf16.msra.mxu0 %v2835_v24  ;;  %485 = vmatprep.mubr.f32.mxu0 %v2742_v3  ;;  %v2655_v24 = vpack.c.bf16 %v1215_v30, %v1208_v29  ;;  %v3289_v29 = vor.u32 %v2522_v19, %v2521_v13  ;;  %v2523_v30 = vld [vmem:[%s4156_s3 + $0x3] ss:$8 sm:$0xf] }
  0x2c   :  { %760 = vmatmul.mubr.f32.gmra.mrb[6].mxu1 %v2847_v28  ;;  %2652 = vmatprep.subr.bf16.mxu0 %v2958_v21 }
  0x2d   :  { %838 = vmatprep.mubr.f32.mxu1 %v2742_v3 }
  0x2e   :  { %487 = vmatmul.mubr.f32.gmra.mrb[2].mxu0 %v2847_v28 }
  0x2f   :  { %561 = vmatprep.mubr.f32.mxu0 %v2742_v3 }
  0x30   :  { %841 = vmatmul.mubr.f32.vlgmr.msra.gmra.mrb[4].mxu1 %v2833_v23 }
  0x31   :  { %846 = vmatprep.mubr.f32.mxu1 %v2742_v3  ;;  %2642 = vmatpush1.bf16.msra.mxu1 %v2924_v18 }
  0x32   :  { %563 = vmatmul.mubr.f32.vlgmr.msra.gmra.mrb[0].mxu0 %v2823_v16  ;;  %2644 = vmatprep.subr.bf16.mxu1 %v2643_v32  ;;  %v2524_v32 = vld [vmem:[%s4156_s3 + $0x3] ss:$8 sm:$0x10] }
  0x33   :  { %568 = vmatprep.mubr.f32.mxu0 %v2742_v3  ;;  %2654 = vmatpush3.bf16.msra.mxu0 %v2958_v21 }
  0x34   :  { %849 = vmatmul.mubr.f32.gmra.mrb[6].mxu1 %v2859_v35  ;;  %2656 = vmatprep.subr.bf16.mxu0 %v2655_v24 }
  0x35   :  { %923 = vmatprep.mubr.f32.mxu1 %v2742_v3 }
  0x36   :  { %570 = vmatmul.mubr.f32.gmra.mrb[2].mxu0 %v2847_v28 }
  0x37   :  { %2565 = vmatprep.mubr.f32.mxu0 %v2874_v45 }
  0x38   :  { %927 = vmatmul.mubr.f32.vlgmr.msra.gmra.mrb[4].mxu1 %v2856_v31 }
  0x39   :  { %932 = vmatprep.mubr.f32.mxu1 %v2742_v3  ;;  %2646 = vmatpush1.bf16.msra.mxu1 %v2645_v33 }
  0x3a   :  { %2648 = vmatprep.subr.bf16.mxu1 %v2881_v52  ;;  %2566 = vmatmul.mubr.f32.vlgmr.msra.gmra.mrb[4].mxu0 %v2888_v55 }
  0x3b   :  { %2658 = vmatpush3.bf16.msra.mxu0 %v2655_v24  ;;  %2572 = vmatprep.mubr.f32.mxu0 %v2823_v16 }
  0x3c   :  { %936 = vmatmul.mubr.f32.gmra.mrb[6].mxu1 %v2868_v41  ;;  %2660 = vmatprep.subr.bf16.mxu0 %v2659_v34 }
  0x3d   :  { %1018 = vmatprep.mubr.f32.mxu1 %v2742_v3 }
  0x40   :  { %1020 = vmatmul.mubr.f32.vlgmr.msra.gmra.mrb[4].mxu1 %v2823_v16 }
  0x41   :  { %1025 = vmatprep.mubr.f32.mxu1 %v2742_v3  ;;  %2650 = vmatpush1.bf16.msra.mxu1 %v2924_v18  ;;  %v3230_v18 = vand.u32 127, %v1623_v61 }
  0x42   :  { %2573 = vmatmul.mubr.f32.vlgmr.msra.gmra.mrb[4].mxu0 %v2847_v28 }
  0x43   :  { %2662 = vmatpush3.bf16.msra.mxu0 %v2659_v34  ;;  %2579 = vmatprep.mubr.f32.mxu0 %v2833_v23  ;;  %vm1680_vm1 = vcmp.lt.s32.totalorder %v3230_v18, 5  ;;  %vm1760_vm2 = vcmp.lt.s32.totalorder %v3230_v18, 4  ;;  %vm1841_vm3 = vcmp.lt.s32.totalorder %v3230_v18, 3  ;;  %vm1922_vm4 = vcmp.lt.s32.totalorder %v3230_v18, 2 }
  0x44   :  { %1027 = vmatmul.mubr.f32.gmra.mrb[6].mxu1 %v2847_v28  ;;  %2664 = vmatprep.subr.bf16.mxu0 %v2958_v21  ;;  %vm2003_vm5 = vcmp.lt.s32.totalorder %v3230_v18, 1  ;;  %vm2084_vm6 = vcmp.lt.s32.totalorder %v3230_v18, 127  ;;  %vm2165_vm7 = vcmp.lt.s32.totalorder %v3230_v18, 126  ;;  %vm2246_vm8 = vcmp.lt.s32.totalorder %v3230_v18, 125 }
  0x45   :  { %1101 = vmatprep.mubr.f32.mxu1 %v2742_v3  ;;  %vm2327_vm9 = vcmp.lt.s32.totalorder %v3230_v18, 124  ;;  %vm2408_vm10 = vcmp.lt.s32.totalorder %v3230_v18, 123 }
  0x48   :  { %1103 = vmatmul.mubr.f32.vlgmr.msra.gmra.mrb[4].mxu1 %v2823_v16 }
  0x49   :  { %1108 = vmatprep.mubr.f32.mxu1 %v2742_v3 }
  0x4a   :  { %2580 = vmatmul.mubr.f32.vlgmr.msra.gmra.mrb[4].mxu0 %v2859_v35 }
  0x4b   :  { %2666 = vmatpush3.bf16.msra.mxu0 %v2958_v21  ;;  %2586 = vmatprep.mubr.f32.mxu0 %v2856_v31 }
  0x4c   :  { %1110 = vmatmul.mubr.f32.gmra.mrb[6].mxu1 %v2847_v28  ;;  %2668 = vmatprep.subr.bf16.mxu0 %v2667_v36 }
  0x52   :  { %2587 = vmatmul.mubr.f32.vlgmr.msra.gmra.mrb[4].mxu0 %v2868_v41 }
  0x53   :  { %2670 = vmatpush3.bf16.msra.mxu0 %v2667_v36  ;;  %2593 = vmatprep.mubr.f32.mxu0 %v2823_v16 }
  0x54   :  { %2672 = vmatprep.subr.bf16.mxu0 %v2958_v21 }
  0x5a   :  { %2594 = vmatmul.mubr.f32.vlgmr.msra.gmra.mrb[4].mxu0 %v2847_v28 }
  0x5b   :  { %2674 = vmatpush3.bf16.msra.mxu0 %v2958_v21  ;;  %2600 = vmatprep.mubr.f32.mxu0 %v2823_v16 }
  0x62   :  { %2601 = vmatmul.mubr.f32.vlgmr.msra.gmra.mrb[4].mxu0 %v2847_v28 }
  0xe2   :  { %v111_v3 = vpop.f32.mrb[0].mxu1 }
  0xe3   :  { %v113_v23 = vpop.f32.mrb[1].mxu1 }
  0xef   :  { %v221_v31 = vpop.f32.mrb[2].mxu1 }
  0xf0   :  { %v223_v35 = vpop.f32.mrb[3].mxu1 }
 0x105   :  { %v564_v37 = vpop.f32.mrb[0].mxu0 }
 0x106   :  { %v3020_v38 = vadd.f32 %v564_v37, %v111_v3  ;;  %v566_v39 = vpop.f32.mrb[1].mxu0  ;;  %v2525_v37 = vld [vmem:[%s4156_s3 + $0x4] ss:$8 sm:$0xf] }
 0x107   :  { %v3022_v40 = vadd.f32 %v566_v39, %v113_v23  ;;  %v2526_v39 = vld [vmem:[%s4156_s3 + $0x4] ss:$8 sm:$0x10] }
 0x108   :  { %1658 = vrot.lane.b32.xlu0 %v3020_v38, %s2743_s0  ;;  %v3344_v11 = vor.u32 %v2526_v39, %v2525_v37 }
 0x109   :  { %v571_v41 = vpop.f32.mrb[2].mxu0  ;;  %1662 = vrot.lane.b32.xlu1 %v3022_v40, %s2743_s0  ;;  %v1649_v34 = vmul.f32 %v3022_v40, %v3274_v20 }
 0x10a   :  { %v3028_v16 = vadd.f32 %v571_v41, %v221_v31  ;;  %v573_v28 = vpop.f32.mrb[3].mxu0  ;;  %v3316_v31 = vrot.slane %v3289_v29, %v3249_v1 }
 0x10b   :  { %v3030_v42 = vadd.f32 %v573_v28, %v223_v35  ;;  %v3318_v35 = vor.u32 %v2524_v32, %v2523_v30  ;;  %v3362_v30 = vrot.slane %v3344_v11, %v3249_v1 }
 0x10c   :  { %1740 = vrot.lane.b32.xlu0 %v3020_v38, %s2744_s2 }
 0x10d   :  { %1742 = vrot.lane.b32.xlu1 %v3028_v16, %s2744_s2  ;;  %v3342_v9 = vrot.slane %v3318_v35, %v3249_v1 }
 0x110   :  { %1821 = vrot.lane.b32.xlu0 %v3020_v38, %s2745_s26 }
 0x111   :  { %1823 = vrot.lane.b32.xlu1 %v3028_v16, %s2745_s26 }
 0x114   :  { %1902 = vrot.lane.b32.xlu0 %v3020_v38, %s2746_s27 }
 0x115   :  { %1904 = vrot.lane.b32.xlu1 %v3028_v16, %s2746_s27 }
 0x118   :  { %1983 = vrot.lane.b32.xlu0 %v3020_v38, %s2747_s28 }
 0x119   :  { %1985 = vrot.lane.b32.xlu1 %v3028_v16, %s2747_s28 }
 0x11b   :  { %v3048_v43 = vpop.f32.mrb[4].mxu1 }
 0x11c   :  { %2064 = vrot.lane.b32.xlu0 %v3020_v38, %s2748_s29  ;;  %v3052_v44 = vpop.f32.mrb[5].mxu1 }
 0x11d   :  { %2066 = vrot.lane.b32.xlu1 %v3028_v16, %s2748_s29 }
 0x11f   :  { %v3056_v45 = vpop.f32.mrb[6].mxu1 }
 0x120   :  { %2145 = vrot.lane.b32.xlu0 %v3020_v38, %s2749_s30  ;;  %v3060_v46 = vpop.f32.mrb[7].mxu1 }
 0x121   :  { %2147 = vrot.lane.b32.xlu1 %v3028_v16, %s2749_s30 }
 0x124   :  { %2226 = vrot.lane.b32.xlu0 %v3020_v38, %s2750_s5 }
 0x125   :  { %2228 = vrot.lane.b32.xlu1 %v3028_v16, %s2750_s5 }
 0x128   :  { %2307 = vrot.lane.b32.xlu0 %v3020_v38, %s2751_s6 }
 0x129   :  { %2309 = vrot.lane.b32.xlu1 %v3028_v16, %s2751_s6 }
 0x12c   :  { %2388 = vrot.lane.b32.xlu0 %v3020_v38, %s2752_s7 }
 0x12d   :  { %2390 = vrot.lane.b32.xlu1 %v3028_v16, %s2752_s7 }
 0x130   :  { %1744 = vrot.lane.b32.xlu0 %v3022_v40, %s2744_s2 }
 0x131   :  { %1664 = vrot.lane.b32.xlu1 %v3030_v42, %s2743_s0 }
 0x134   :  { %1825 = vrot.lane.b32.xlu0 %v3022_v40, %s2745_s26 }
 0x135   :  { %1746 = vrot.lane.b32.xlu1 %v3030_v42, %s2744_s2  ;;  %v3084_v47 = vpop.f32.mrb[4].mxu0 }
 0x136   :  { %v3086_v48 = vpop.f32.mrb[5].mxu0 }
 0x138   :  { %1906 = vrot.lane.b32.xlu0 %v3022_v40, %s2746_s27 }
 0x139   :  { %1827 = vrot.lane.b32.xlu1 %v3030_v42, %s2745_s26 }
 0x13c   :  { %1987 = vrot.lane.b32.xlu0 %v3022_v40, %s2747_s28 }
 0x13d   :  { %1908 = vrot.lane.b32.xlu1 %v3030_v42, %s2746_s27 }
 0x140   :  { %2068 = vrot.lane.b32.xlu0 %v3022_v40, %s2748_s29 }
 0x141   :  { %1989 = vrot.lane.b32.xlu1 %v3030_v42, %s2747_s28 }
 0x144   :  { %2149 = vrot.lane.b32.xlu0 %v3022_v40, %s2749_s30 }
 0x145   :  { %2070 = vrot.lane.b32.xlu1 %v3030_v42, %s2748_s29 }
 0x148   :  { %2230 = vrot.lane.b32.xlu0 %v3022_v40, %s2750_s5 }
 0x149   :  { %2151 = vrot.lane.b32.xlu1 %v3030_v42, %s2749_s30 }
 0x14c   :  { %2311 = vrot.lane.b32.xlu0 %v3022_v40, %s2751_s6 }
 0x14d   :  { %2232 = vrot.lane.b32.xlu1 %v3030_v42, %s2750_s5 }
 0x150   :  { %2392 = vrot.lane.b32.xlu0 %v3022_v40, %s2752_s7 }
 0x151   :  { %2313 = vrot.lane.b32.xlu1 %v3030_v42, %s2751_s6 }
 0x154   :  { %1660 = vrot.lane.b32.xlu0 %v3028_v16, %s2743_s0 }
 0x155   :  { %2394 = vrot.lane.b32.xlu1 %v3030_v42, %s2752_s7 }
 0x158   :  { %1666 = vrot.lane.b32.xlu0 %v3048_v43, %s2743_s0 }
 0x159   :  { %1668 = vrot.lane.b32.xlu1 %v3056_v45, %s2743_s0 }
 0x15c   :  { %1748 = vrot.lane.b32.xlu0 %v3048_v43, %s2744_s2 }
 0x15d   :  { %1750 = vrot.lane.b32.xlu1 %v3056_v45, %s2744_s2 }
 0x160   :  { %1829 = vrot.lane.b32.xlu0 %v3048_v43, %s2745_s26 }
 0x161   :  { %1831 = vrot.lane.b32.xlu1 %v3056_v45, %s2745_s26 }
 0x164   :  { %1910 = vrot.lane.b32.xlu0 %v3048_v43, %s2746_s27 }
 0x165   :  { %1912 = vrot.lane.b32.xlu1 %v3056_v45, %s2746_s27 }
 0x168   :  { %1991 = vrot.lane.b32.xlu0 %v3048_v43, %s2747_s28 }
 0x169   :  { %1993 = vrot.lane.b32.xlu1 %v3056_v45, %s2747_s28 }
 0x16c   :  { %2072 = vrot.lane.b32.xlu0 %v3048_v43, %s2748_s29 }
 0x16d   :  { %2074 = vrot.lane.b32.xlu1 %v3056_v45, %s2748_s29 }
 0x170   :  { %2153 = vrot.lane.b32.xlu0 %v3048_v43, %s2749_s30 }
 0x171   :  { %2155 = vrot.lane.b32.xlu1 %v3056_v45, %s2749_s30 }
 0x174   :  { %2234 = vrot.lane.b32.xlu0 %v3048_v43, %s2750_s5 }
 0x175   :  { %2236 = vrot.lane.b32.xlu1 %v3056_v45, %s2750_s5 }
 0x178   :  { %2315 = vrot.lane.b32.xlu0 %v3048_v43, %s2751_s6 }
 0x179   :  { %2317 = vrot.lane.b32.xlu1 %v3056_v45, %s2751_s6 }
 0x17a   :  { %v3156_v49 = vpop.permute.xlu0 %1658 }
 0x17b   :  { %4190 = vst [vmem:[#allocation2_spill] sm:$0xff] %v3156_v49  ;;  %v3158_v50 = vpop.permute.xlu1 %1662 }
 0x17c   :  { %2396 = vrot.lane.b32.xlu0 %v3048_v43, %s2752_s7  ;;  %v1687_v21 = vsel %vm1680_vm1, %v3156_v49, %v3158_v50 }
 0x17d   :  { %1672 = vrot.lane.b32.xlu1 %v3060_v46, %s2743_s0  ;;  %v1721_v24 = vmul.f32 %v3268_v14, %v1687_v21 }
 0x17e   :  { %v3164_v51 = vpop.permute.xlu0 %1740 }
 0x17f   :  { %4191 = vst [vmem:[#allocation3_spill] sm:$0xff] %v3164_v51  ;;  %v3166_v52 = vpop.permute.xlu1 %1742  ;;  %v1731_v40 = vadd.f32 %v1721_v24, %v1649_v34 }
 0x180   :  { %1670 = vrot.lane.b32.xlu0 %v3052_v44, %s2743_s0 }
 0x181   :  { %1754 = vrot.lane.b32.xlu1 %v3060_v46, %s2744_s2 }
 0x182   :  { %v3172_v53 = vpop.permute.xlu0 %1821 }
 0x183   :  { %4192 = vst [vmem:[#allocation4_spill] sm:$0xff] %v3172_v53  ;;  %v3174_v54 = vpop.permute.xlu1 %1823 }
 0x184   :  { %1752 = vrot.lane.b32.xlu0 %v3052_v44, %s2744_s2 }
 0x185   :  { %1835 = vrot.lane.b32.xlu1 %v3060_v46, %s2745_s26 }
 0x186   :  { %v3180_v55 = vpop.permute.xlu0 %1902 }
 0x187   :  { %4193 = vst [vmem:[#allocation5_spill] sm:$0xff] %v3180_v55  ;;  %v3182_v56 = vpop.permute.xlu1 %1904 }
 0x188   :  { %1833 = vrot.lane.b32.xlu0 %v3052_v44, %s2745_s26 }
 0x189   :  { %1916 = vrot.lane.b32.xlu1 %v3060_v46, %s2746_s27 }
 0x18a   :  { %v3188_v57 = vpop.permute.xlu0 %1983 }
 0x18b   :  { %4194 = vst [vmem:[#allocation6_spill] sm:$0xff] %v3188_v57  ;;  %v3190_v58 = vpop.permute.xlu1 %1985 }
 0x18c   :  { %1914 = vrot.lane.b32.xlu0 %v3052_v44, %s2746_s27 }
 0x18d   :  { %1997 = vrot.lane.b32.xlu1 %v3060_v46, %s2747_s28 }
 0x18e   :  { %v3196_v59 = vpop.permute.xlu0 %2064 }
 0x18f   :  { %4195 = vst [vmem:[#allocation7_spill] sm:$0xff] %v3196_v59  ;;  %v3198_v60 = vpop.permute.xlu1 %2066 }
 0x190   :  { %4196 = vst [vmem:[#allocation8_spill] sm:$0xff] %v3198_v60  ;;  %1995 = vrot.lane.b32.xlu0 %v3052_v44, %s2747_s28 }
 0x191   :  { %2078 = vrot.lane.b32.xlu1 %v3060_v46, %s2748_s29 }
 0x192   :  { %v3204_v62 = vpop.permute.xlu0 %2145 }
 0x193   :  { %4197 = vst [vmem:[#allocation9_spill] sm:$0xff] %v3204_v62  ;;  %v3206_v63 = vpop.permute.xlu1 %2147 }
 0x194   :  { %4198 = vst [vmem:[#allocation10_spill] sm:$0xff] %v3206_v63  ;;  %2076 = vrot.lane.b32.xlu0 %v3052_v44, %s2748_s29 }
 0x195   :  { %2159 = vrot.lane.b32.xlu1 %v3060_v46, %s2749_s30 }
 0x196   :  { %v3217_v7 = vpop.permute.xlu0 %2226 }
 0x197   :  { %4199 = vst [vmem:[#allocation11_spill] sm:$0xff] %v3217_v7  ;;  %v3225_v10 = vpop.permute.xlu1 %2228 }
 0x198   :  { %4200 = vst [vmem:[#allocation12_spill] sm:$0xff] %v3225_v10  ;;  %2157 = vrot.lane.b32.xlu0 %v3052_v44, %s2749_s30 }
 0x199   :  { %2240 = vrot.lane.b32.xlu1 %v3060_v46, %s2750_s5 }
 0x19a   :  { %v3244_v0 = vpop.permute.xlu0 %2307 }
 0x19b   :  { %4201 = vst [vmem:[#allocation13_spill] sm:$0xff] %v3244_v0  ;;  %v3251_v6 = vpop.permute.xlu1 %2309 }
 0x19c   :  { %4202 = vst [vmem:[#allocation14_spill] sm:$0xff] %v3251_v6  ;;  %2238 = vrot.lane.b32.xlu0 %v3052_v44, %s2750_s5 }
 0x19d   :  { %2321 = vrot.lane.b32.xlu1 %v3060_v46, %s2751_s6 }
 0x19e   :  { %v3270_v15 = vpop.permute.xlu0 %2388 }
 0x19f   :  { %4203 = vst [vmem:[#allocation15_spill] sm:$0xff] %v3270_v15  ;;  %v3280_v17 = vpop.permute.xlu1 %2390 }
 0x1a0   :  { %4204 = vst [vmem:[#allocation16_spill] sm:$0xff] %v3280_v17  ;;  %2319 = vrot.lane.b32.xlu0 %v3052_v44, %s2751_s6 }
 0x1a1   :  { %1676 = vrot.lane.b32.xlu1 %v3084_v47, %s2743_s0 }
 0x1a2   :  { %v3300_v33 = vpop.permute.xlu0 %1744 }
 0x1a3   :  { %v1767_v36 = vsel %vm1760_vm2, %v3164_v51, %v3300_v33  ;;  %v3308_v3 = vpop.permute.xlu1 %1664  ;;  %v1654_v51 = vmul.f32 %v3030_v42, %v3274_v20 }
 0x1a4   :  { %v1802_v23 = vmul.f32 %v3287_v22, %v1767_v36  ;;  %2001 = vrot.lane.b32.xlu0 %v3084_v47, %s2747_s28 }
 0x1a5   :  { %1758 = vrot.lane.b32.xlu1 %v3084_v47, %s2744_s2 }
 0x1a6   :  { %v3328_v41 = vpop.permute.xlu0 %1825  ;;  %v1812_v4 = vadd.f32 %v1802_v23, %v1731_v40 }
 0x1a7   :  { %v1848_v28 = vsel %vm1841_vm3, %v3172_v53, %v3328_v41  ;;  %v3334_v61 = vpop.permute.xlu1 %1746 }
 0x1a8   :  { %v1883_v8 = vmul.f32 %v3316_v31, %v1848_v28  ;;  %1674 = vrot.lane.b32.xlu0 %v3086_v48, %s2743_s0 }
 0x1a9   :  { %1839 = vrot.lane.b32.xlu1 %v3084_v47, %s2745_s26 }
 0x1aa   :  { %v1893_v25 = vadd.f32 %v1883_v8, %v1812_v4  ;;  %v3348_v26 = vpop.permute.xlu0 %1906 }
 0x1ab   :  { %v1929_v13 = vsel %vm1922_vm4, %v3180_v55, %v3348_v26  ;;  %v3354_v19 = vpop.permute.xlu1 %1827  ;;  %v1768_v55 = vsel %vm1760_vm2, %v3166_v52, %v3334_v61 }
 0x1ac   :  { %v1964_v21 = vmul.f32 %v3342_v9, %v1929_v13  ;;  %1756 = vrot.lane.b32.xlu0 %v3086_v48, %s2744_s2  ;;  %v1849_v10 = vsel %vm1841_vm3, %v3174_v54, %v3354_v19 }
 0x1ad   :  { %1920 = vrot.lane.b32.xlu1 %v3084_v47, %s2746_s27 }
 0x1ae   :  { %v1974_v32 = vadd.f32 %v1964_v21, %v1893_v25  ;;  %v3366_v24 = vpop.permute.xlu0 %1987 }
 0x1af   :  { %v2010_v34 = vsel %vm2003_vm5, %v3188_v57, %v3366_v24  ;;  %v3372_v36 = vpop.permute.xlu1 %1908 }
 0x1b0   :  { %v2045_v23 = vmul.f32 %v3362_v30, %v2010_v34  ;;  %1837 = vrot.lane.b32.xlu0 %v3086_v48, %s2745_s26 }
 0x1b1   :  { %2082 = vrot.lane.b32.xlu1 %v3084_v47, %s2748_s29 }
 0x1b2   :  { %v3379_v37 = vadd.f32 %v2045_v23, %v1974_v32  ;;  %v3381_v39 = vpop.permute.xlu0 %2068  ;;  %v3418_v23 = vsub.s32 2, %v3215_v5 }
 0x1b3   :  { %4205 = vst [vmem:[#allocation17_spill] sm:$0xff] %v3381_v39  ;;  %v3383_v40 = vpop.permute.xlu1 %1989 }
 0x1b4   :  { %1918 = vrot.lane.b32.xlu0 %v3086_v48, %s2746_s27  ;;  %v1634_v15 = vrot.slane %v3246_v2, %v3418_v23  ;;  %v1706_v49 = vrot.slane %v3242_v27, %v3418_v23 }
 0x1b5   :  { %2163 = vrot.lane.b32.xlu1 %v3084_v47, %s2749_s30 }
 0x1b6   :  { %v3389_v28 = vpop.permute.xlu0 %2149 }
 0x1b7   :  { %4206 = vst [vmem:[#allocation18_spill] sm:$0xff] %v3389_v28  ;;  %v3391_v4 = vpop.permute.xlu1 %2070 }
 0x1b8   :  { %2400 = vrot.lane.b32.xlu0 %v3052_v44, %s2752_s7 }
 0x1b9   :  { %2244 = vrot.lane.b32.xlu1 %v3084_v47, %s2750_s5 }
 0x1ba   :  { %v3397_v8 = vpop.permute.xlu0 %2230 }
 0x1bb   :  { %4207 = vst [vmem:[#allocation19_spill] sm:$0xff] %v3397_v8  ;;  %v3399_v25 = vpop.permute.xlu1 %2151 }
 0x1bc   :  { %4208 = vst [vmem:[#allocation20_spill] sm:$0xff] %v3399_v25  ;;  %2080 = vrot.lane.b32.xlu0 %v3086_v48, %s2748_s29 }
 0x1bd   :  { %2325 = vrot.lane.b32.xlu1 %v3084_v47, %s2751_s6 }
 0x1be   :  { %v3405_v13 = vpop.permute.xlu0 %2311 }
 0x1bf   :  { %v3407_v21 = vpop.permute.xlu1 %2232 }
 0x1c0   :  { %4209 = vst [vmem:[#allocation21_spill] sm:$0xff] %v3407_v21  ;;  %2161 = vrot.lane.b32.xlu0 %v3086_v48, %s2749_s30 }
 0x1c1   :  { %1999 = vrot.lane.b32.xlu1 %v3086_v48, %s2747_s28 }
 0x1c2   :  { %v3413_v32 = vpop.permute.xlu0 %2392 }
 0x1c3   :  { %4210 = vst [vmem:[#allocation22_spill] sm:$0xff] %v3413_v32  ;;  %v3415_v34 = vpop.permute.xlu1 %2313 }
 0x1c4   :  { %2242 = vrot.lane.b32.xlu0 %v3086_v48, %s2750_s5 }
 0x1c5   :  { %2398 = vrot.lane.b32.xlu1 %v3056_v45, %s2752_s7 }
 0x1c6   :  { %v3424_v57 = vpop.permute.xlu0 %1660 }
 0x1c7   :  { %v1688_v53 = vsel %vm1680_vm1, %v3424_v57, %v3308_v3  ;;  %v3434_v17 = vpop.permute.xlu1 %2394 }
 0x1c8   :  { %4211 = vst [vmem:[#allocation23_spill] sm:$0xff] %v3434_v17  ;;  %v1726_v6 = vmul.f32 %v3268_v14, %v1688_v53  ;;  %2323 = vrot.lane.b32.xlu0 %v3086_v48, %s2751_s6  ;;  %v1807_v17 = vmul.f32 %v3287_v22, %v1768_v55  ;;  %v1930_v53 = vsel %vm1922_vm4, %v3182_v56, %v3372_v36 }
 0x1c9   :  { %2402 = vrot.lane.b32.xlu1 %v3060_v46, %s2752_s7  ;;  %v1650_v14 = vmul.f32 %v1634_v15, %v3048_v43  ;;  %v1787_v55 = vrot.slane %v3256_v12, %v3418_v23  ;;  %v2011_v43 = vsel %vm2003_vm5, %v3190_v58, %v3383_v40 }
 0x1ca   :  { %v1736_v0 = vadd.f32 %v1726_v6, %v1654_v51  ;;  %v3452_v42 = vpop.permute.xlu0 %1666  ;;  %v1888_v51 = vmul.f32 %v3316_v31, %v1849_v10  ;;  %v1969_v10 = vmul.f32 %v3342_v9, %v1930_v53 }
 0x1cb   :  { %v1685_v20 = vsel %vm1680_vm1, %v3158_v50, %v3452_v42  ;;  %v3463_v7 = vpop.permute.xlu1 %1668  ;;  %v1655_v50 = vmul.f32 %v1634_v15, %v3056_v45  ;;  %v1868_v45 = vrot.slane %v3289_v29, %v3418_v23 }
 0x1cc   :  { %v1817_v6 = vadd.f32 %v1807_v17, %v1736_v0  ;;  %v1722_v22 = vmul.f32 %v1706_v49, %v1685_v20  ;;  %v1686_v63 = vsel %vm1680_vm1, %v3308_v3, %v3463_v7  ;;  %2404 = vrot.lane.b32.xlu0 %v3086_v48, %s2752_s7 }
 0x1cd   :  { %v1727_v62 = vmul.f32 %v1706_v49, %v1686_v63  ;;  %2406 = vrot.lane.b32.xlu1 %v3084_v47, %s2752_s7  ;;  %v2050_v49 = vmul.f32 %v3362_v30, %v2011_v43 }
 0x1ce   :  { %v1898_v0 = vadd.f32 %v1888_v51, %v1817_v6  ;;  %v1732_v17 = vadd.f32 %v1722_v22, %v1650_v14  ;;  %v3482_v31 = vpop.permute.xlu0 %1748 }
 0x1cf   :  { %v1737_v3 = vadd.f32 %v1727_v62, %v1655_v50  ;;  %v1765_v20 = vsel %vm1760_vm2, %v3300_v33, %v3482_v31  ;;  %v3488_v59 = vpop.permute.xlu1 %1750 }
 0x1d0   :  { %v1803_v63 = vmul.f32 %v1787_v55, %v1765_v20  ;;  %v1766_v15 = vsel %vm1760_vm2, %v3334_v61, %v3488_v59  ;;  %v1979_v9 = vadd.f32 %v1969_v10, %v1898_v0  ;;  %v2527_v0 = vld [vmem:[%s4156_s3 + $0x6] ss:$8 sm:$0xf] }
 0x1d1   :  { %v1808_v62 = vmul.f32 %v1787_v55, %v1766_v15  ;;  %v1949_v55 = vrot.slane %v3318_v35, %v3418_v23 }
 0x1d2   :  { %v1813_v53 = vadd.f32 %v1803_v63, %v1732_v17  ;;  %v3497_v14 = vpop.permute.xlu0 %1829  ;;  %v2060_v51 = vadd.f32 %v2050_v49, %v1979_v9  ;;  %v2030_v49 = vrot.slane %v3344_v11, %v3418_v23 }
 0x1d3   :  { %v1818_v33 = vadd.f32 %v1808_v62, %v1737_v3  ;;  %v1846_v6 = vsel %vm1841_vm3, %v3328_v41, %v3497_v14  ;;  %v3503_v22 = vpop.permute.xlu1 %1831  ;;  %v2528_v41 = vld [vmem:[%s4156_s3 + $0x6] ss:$8 sm:$0x10] }
 0x1d4   :  { %v1884_v30 = vmul.f32 %v1868_v45, %v1846_v6  ;;  %v1847_v61 = vsel %vm1841_vm3, %v3354_v19, %v3503_v22  ;;  %v3531_v15 = vor.u32 %v2528_v41, %v2527_v0 }
 0x1d5   :  { %v1889_v43 = vmul.f32 %v1868_v45, %v1847_v61 }
 0x1d6   :  { %v1894_v50 = vadd.f32 %v1884_v30, %v1813_v53  ;;  %v3511_v10 = vpop.permute.xlu0 %1910  ;;  %v2530_v53 = vld [vmem:[%s4156_s3 + $0x7] ss:$8 sm:$0x10] }
 0x1d7   :  { %v1899_v17 = vadd.f32 %v1889_v43, %v1818_v33  ;;  %v1927_v19 = vsel %vm1922_vm4, %v3348_v26, %v3511_v10  ;;  %v3523_v3 = vpop.permute.xlu1 %1912  ;;  %v2529_v26 = vld [vmem:[%s4156_s3 + $0x7] ss:$8 sm:$0xf] }
 0x1d8   :  { %v1965_v20 = vmul.f32 %v1949_v55, %v1927_v19  ;;  %v1928_v45 = vsel %vm1922_vm4, %v3372_v36, %v3523_v3 }
 0x1d9   :  { %v1970_v63 = vmul.f32 %v1949_v55, %v1928_v45  ;;  %v2107_v55 = vrot.slane %v3531_v15, %v3249_v1 }
 0x1da   :  { %v1975_v9 = vadd.f32 %v1965_v20, %v1894_v50  ;;  %v3533_v62 = vpop.permute.xlu0 %1991  ;;  %v3554_v50 = vor.u32 %v2530_v53, %v2529_v26 }
 0x1db   :  { %v1980_v33 = vadd.f32 %v1970_v63, %v1899_v17  ;;  %v2008_v36 = vsel %vm2003_vm5, %v3366_v24, %v3533_v62  ;;  %v3545_v6 = vpop.permute.xlu1 %1993  ;;  %v2531_v24 = vld [vmem:[%s4156_s3 + $0x28] ss:$8 sm:$0xf] }
 0x1dc   :  { %v2046_v30 = vmul.f32 %v2030_v49, %v2008_v36  ;;  %v2009_v61 = vsel %vm2003_vm5, %v3383_v40, %v3545_v6  ;;  %v2532_v40 = vld [vmem:[%s4156_s3 + $0x28] ss:$8 sm:$0x10]  ;;  %v2188_v63 = vrot.slane %v3554_v50, %v3249_v1  ;;  %v2533_v36 = vld [vmem:[%s4156_s3 + $0x29] ss:$8 sm:$0xf] }
 0x1dd   :  { %v2051_v43 = vmul.f32 %v2030_v49, %v2009_v61  ;;  %v3581_v26 = vor.u32 %v2532_v40, %v2531_v24 }
 0x1de   :  { %v3556_v0 = vadd.f32 %v2046_v30, %v1975_v9  ;;  %v3558_v41 = vpop.permute.xlu0 %2072  ;;  %v2534_v30 = vld [vmem:[%s4156_s3 + $0x29] ss:$8 sm:$0x10] }
 0x1df   :  { %v3566_v17 = vadd.f32 %v2051_v43, %v1980_v33  ;;  %v2089_v19 = vsel %vm2084_vm6, %v3381_v39, %v3558_v41  ;;  %v3572_v20 = vpop.permute.xlu1 %2074  ;;  %v2269_v40 = vrot.slane %v3581_v26, %v3249_v1 }
 0x1e0   :  { %v2126_v45 = vmul.f32 %v2107_v55, %v2089_v19  ;;  %v2090_v49 = vsel %vm2084_vm6, %v3391_v4, %v3572_v20 }
 0x1e1   :  { %v2131_v9 = vmul.f32 %v2107_v55, %v2090_v49 }
 0x1e2   :  { %v2136_v53 = vadd.f32 %v2126_v45, %v3379_v37  ;;  %v3584_v33 = vpop.permute.xlu0 %2153 }
 0x1e3   :  { %v2141_v61 = vadd.f32 %v2131_v9, %v2060_v51  ;;  %v2170_v55 = vsel %vm2165_vm7, %v3389_v28, %v3584_v33  ;;  %v3596_v43 = vpop.permute.xlu1 %2155  ;;  %v3605_v51 = vor.u32 %v2534_v30, %v2533_v36  ;;  %v2535_v9 = vld [vmem:[%s4156_s3 + $0x2a] ss:$8 sm:$0xf] }
 0x1e4   :  { %v2207_v24 = vmul.f32 %v2188_v63, %v2170_v55  ;;  %v2171_v37 = vsel %vm2165_vm7, %v3399_v25, %v3596_v43  ;;  %v2536_v55 = vld [vmem:[%s4156_s3 + $0x2a] ss:$8 sm:$0x10] }
 0x1e5   :  { %v2212_v19 = vmul.f32 %v2188_v63, %v2171_v37  ;;  %v2350_v30 = vrot.slane %v3605_v51, %v3249_v1 }
 0x1e6   :  { %v2217_v45 = vadd.f32 %v2207_v24, %v2136_v53  ;;  %v3607_v49 = vpop.permute.xlu0 %2234 }
 0x1e7   :  { %v2222_v25 = vadd.f32 %v2212_v19, %v2141_v61  ;;  %v2251_v63 = vsel %vm2246_vm8, %v3397_v8, %v3607_v49  ;;  %v3619_v37 = vpop.permute.xlu1 %2236  ;;  %v3628_v61 = vor.u32 %v2536_v55, %v2535_v9 }
 0x1e8   :  { %v2288_v36 = vmul.f32 %v2269_v40, %v2251_v63  ;;  %v2252_v53 = vsel %vm2246_vm8, %v3407_v21, %v3619_v37  ;;  %v3639_v21 = vsub.s32 3, %v3215_v5 }
 0x1e9   :  { %v2293_v24 = vmul.f32 %v2269_v40, %v2252_v53 }
 0x1ea   :  { %v2298_v19 = vadd.f32 %v2288_v36, %v2217_v45  ;;  %v3630_v28 = vpop.permute.xlu0 %2315  ;;  %v3647_v45 = vrot.slane %v3628_v61, %v3249_v1  ;;  %v1710_v9 = vrot.slane %v3242_v27, %v3639_v21  ;;  %v1638_v1 = vrot.slane %v3246_v2, %v3639_v21 }
 0x1eb   :  { %v2303_v8 = vadd.f32 %v2293_v24, %v2222_v25  ;;  %v2332_v63 = vsel %vm2327_vm9, %v3405_v13, %v3630_v28  ;;  %v3636_v39 = vpop.permute.xlu1 %2317 }
 0x1ec   :  { %v2369_v60 = vmul.f32 %v2350_v30, %v2332_v63  ;;  %v2333_v40 = vsel %vm2327_vm9, %v3415_v34, %v3636_v39  ;;  %4212 = vst [vmem:[#allocation24_spill] sm:$0xff] %v3647_v45 }
 0x1ed   :  { %v2374_v25 = vmul.f32 %v2350_v30, %v2333_v40  ;;  %v1791_v40 = vrot.slane %v3256_v12, %v3639_v21 }
 0x1ee   :  { %v2379_v55 = vadd.f32 %v2369_v60, %v2298_v19  ;;  %v3652_v36 = vpop.permute.xlu0 %2396 }
 0x1ef   :  { %4213 = vst [vmem:[#allocation25_spill] sm:$0xff] %v3652_v36  ;;  %v3654_v53 = vadd.f32 %v2374_v25, %v2303_v8  ;;  %v2413_v24 = vsel %vm2408_vm10, %v3413_v32, %v3652_v36  ;;  %v3662_v63 = vpop.permute.xlu1 %1672  ;;  %v1656_v8 = vmul.f32 %v1638_v1, %v3060_v46 }
 0x1f0   :  { %v2450_v30 = vmul.f32 %v3647_v45, %v2413_v24  ;;  %v1684_v60 = vsel %vm1680_vm1, %v3463_v7, %v3662_v63  ;;  %v1651_v7 = vmul.f32 %v1638_v1, %v3052_v44 }
 0x1f1   :  { %4214 = vst [vmem:[#allocation26_spill] sm:$0xff] %v3654_v53  ;;  %v1728_v19 = vmul.f32 %v1710_v9, %v1684_v60 }
 0x1f2   :  { %v3672_v25 = vadd.f32 %v2450_v30, %v2379_v55  ;;  %v3674_v53 = vpop.permute.xlu0 %1670  ;;  %v1872_v30 = vrot.slane %v3289_v29, %v3639_v21 }
 0x1f3   :  { %v1738_v36 = vadd.f32 %v1728_v19, %v1656_v8  ;;  %v1683_v24 = vsel %vm1680_vm1, %v3452_v42, %v3674_v53  ;;  %v3680_v45 = vpop.permute.xlu1 %1754 }
 0x1f4   :  { %v1723_v32 = vmul.f32 %v1710_v9, %v1683_v24  ;;  %v1764_v46 = vsel %vm1760_vm2, %v3488_v59, %v3680_v45 }
 0x1f5   :  { %v1809_v55 = vmul.f32 %v1791_v40, %v1764_v46 }
 0x1f6   :  { %v1733_v60 = vadd.f32 %v1723_v32, %v1651_v7  ;;  %v3689_v8 = vpop.permute.xlu0 %1752  ;;  %v1953_v32 = vrot.slane %v3318_v35, %v3639_v21 }
 0x1f7   :  { %v1819_v19 = vadd.f32 %v1809_v55, %v1738_v36  ;;  %v1763_v42 = vsel %vm1760_vm2, %v3482_v31, %v3689_v8  ;;  %v3695_v44 = vpop.permute.xlu1 %1835 }
 0x1f8   :  { %v1804_v9 = vmul.f32 %v1791_v40, %v1763_v42  ;;  %v1845_v59 = vsel %vm1841_vm3, %v3503_v22, %v3695_v44 }
 0x1f9   :  { %v1890_v1 = vmul.f32 %v1872_v30, %v1845_v59 }
 0x1fa   :  { %v1814_v24 = vadd.f32 %v1804_v9, %v1733_v60  ;;  %v3703_v7 = vpop.permute.xlu0 %1833  ;;  %v2034_v60 = vrot.slane %v3344_v11, %v3639_v21 }
 0x1fb   :  { %v1900_v36 = vadd.f32 %v1890_v1, %v1819_v19  ;;  %v1844_v31 = vsel %vm1841_vm3, %v3497_v14, %v3703_v7  ;;  %v3709_v46 = vpop.permute.xlu1 %1916 }
 0x1fc   :  { %v1885_v40 = vmul.f32 %v1872_v30, %v1844_v31  ;;  %v1926_v22 = vsel %vm1922_vm4, %v3523_v3, %v3709_v46 }
 0x1fd   :  { %v1971_v55 = vmul.f32 %v1953_v32, %v1926_v22 }
 0x1fe   :  { %v1895_v42 = vadd.f32 %v1885_v40, %v1814_v24  ;;  %v3717_v9 = vpop.permute.xlu0 %1914  ;;  %v2111_v24 = vrot.slane %v3531_v15, %v3418_v23 }
 0x1ff   :  { %v1981_v19 = vadd.f32 %v1971_v55, %v1900_v36  ;;  %v1925_v14 = vsel %vm1922_vm4, %v3511_v10, %v3717_v9  ;;  %v3723_v59 = vpop.permute.xlu1 %1997 }
 0x200   :  { %v1966_v30 = vmul.f32 %v1953_v32, %v1925_v14  ;;  %v2007_v3 = vsel %vm2003_vm5, %v3545_v6, %v3723_v59 }
 0x201   :  { %v2052_v1 = vmul.f32 %v2034_v60, %v2007_v3 }
 0x202   :  { %v1976_v31 = vadd.f32 %v1966_v30, %v1895_v42  ;;  %v3731_v40 = vpop.permute.xlu0 %1995  ;;  %v2192_v42 = vrot.slane %v3554_v50, %v3418_v23 }
 0x203   :  { %v3733_v36 = vadd.f32 %v2052_v1, %v1981_v19  ;;  %v2006_v10 = vsel %vm2003_vm5, %v3533_v62, %v3731_v40  ;;  %v3739_v32 = vpop.permute.xlu1 %2078 }
 0x204   :  { %v2047_v22 = vmul.f32 %v2034_v60, %v2006_v10  ;;  %v2088_v6 = vsel %vm2084_vm6, %v3572_v20, %v3739_v32 }
 0x205   :  { %v2132_v55 = vmul.f32 %v2111_v24, %v2088_v6 }
 0x206   :  { %v3747_v14 = vadd.f32 %v2047_v22, %v1976_v31  ;;  %v3749_v19 = vpop.permute.xlu0 %2076  ;;  %v2273_v31 = vrot.slane %v3581_v26, %v3418_v23  ;;  %v1625_v22 = vsub.s32 0, %v3215_v5 }
 0x207   :  { %v2142_v30 = vadd.f32 %v2132_v55, %v3566_v17  ;;  %v2087_v62 = vsel %vm2084_vm6, %v3558_v41, %v3749_v19  ;;  %v3756_v60 = vpop.permute.xlu1 %2159 }
 0x208   :  { %4215 = vst [vmem:[#allocation27_spill] sm:$0xff] %v3747_v14  ;;  %v2127_v3 = vmul.f32 %v2111_v24, %v2087_v62  ;;  %v2169_v20 = vsel %vm2165_vm7, %v3596_v43, %v3756_v60 }
 0x209   :  { %v2213_v1 = vmul.f32 %v2192_v42, %v2169_v20 }
 0x20a   :  { %v2137_v10 = vadd.f32 %v2127_v3, %v3556_v0  ;;  %v3765_v17 = vpop.permute.xlu0 %2157  ;;  %v2354_v0 = vrot.slane %v3605_v51, %v3418_v23  ;;  %v3781_v3 = vsub.s32 4, %v3215_v5 }
 0x20b   :  { %v2223_v6 = vadd.f32 %v2213_v1, %v2142_v30  ;;  %v2168_v41 = vsel %vm2165_vm7, %v3584_v33, %v3765_v17  ;;  %v3772_v24 = vpop.permute.xlu1 %2240 }
 0x20c   :  { %v2208_v55 = vmul.f32 %v2192_v42, %v2168_v41  ;;  %v2250_v43 = vsel %vm2246_vm8, %v3619_v37, %v3772_v24  ;;  %v1626_v37 = vrot.slane %v3246_v2, %v1625_v22 }
 0x20d   :  { %v2294_v62 = vmul.f32 %v2273_v31, %v2250_v43 }
 0x20e   :  { %v2218_v30 = vadd.f32 %v2208_v55, %v2137_v10  ;;  %v3783_v20 = vpop.permute.xlu0 %2238  ;;  %v1642_v10 = vrot.slane %v3246_v2, %v3781_v3 }
 0x20f   :  { %4216 = vst [vmem:[#allocation28_spill] sm:$0xff] %v3783_v20  ;;  %v2304_v1 = vadd.f32 %v2294_v62, %v2223_v6  ;;  %v2249_v33 = vsel %vm2246_vm8, %v3607_v49, %v3783_v20  ;;  %v3789_v42 = vpop.permute.xlu1 %2321  ;;  %v1714_v6 = vrot.slane %v3242_v27, %v3781_v3 }
 0x210   :  { %4217 = vst [vmem:[#allocation29_spill] sm:$0xff] %v3789_v42  ;;  %v2289_v41 = vmul.f32 %v2273_v31, %v2249_v33  ;;  %v2331_v5 = vsel %vm2327_vm9, %v3636_v39, %v3789_v42  ;;  %v3809_v39 = vmul.f32 %v3020_v38, %v1626_v37  ;;  %v1653_v42 = vmul.f32 %v3028_v16, %v1626_v37 }
 0x211   :  { %v2375_v43 = vmul.f32 %v2354_v0, %v2331_v5  ;;  %v3812_v5 = vrot.slane %v3531_v15, %v1625_v22  ;;  %v1795_v38 = vrot.slane %v3256_v12, %v3781_v3 }
 0x212   :  { %v2299_v55 = vadd.f32 %v2289_v41, %v2218_v30  ;;  %v3800_v62 = vpop.permute.xlu0 %2319  ;;  %v3820_v41 = vrot.slane %v3242_v27, %v1625_v22  ;;  %v3837_v27 = vrot.slane %v3605_v51, %v1625_v22 }
 0x213   :  { %4218 = vst [vmem:[#allocation30_spill] sm:$0xff] %v3800_v62  ;;  %v3802_v49 = vadd.f32 %v2375_v43, %v2304_v1  ;;  %v2330_v31 = vsel %vm2327_vm9, %v3630_v28, %v3800_v62  ;;  %v1677_v33 = vpop.permute.xlu1 %1676  ;;  %v1657_v1 = vmul.f32 %v3084_v47, %v1642_v10  ;;  %v3825_v43 = vrot.slane %v3554_v50, %v1625_v22 }
 0x214   :  { %v2370_v2 = vmul.f32 %v2354_v0, %v2330_v31  ;;  %v1682_v30 = vsel %vm1680_vm1, %v3662_v63, %v1677_v33  ;;  %v1690_v16 = vsel %vm1680_vm1, %v1677_v33, %v3424_v57  ;;  %v1652_v63 = vmul.f32 %v1642_v10, %v3086_v48 }
 0x215   :  { %4219 = vst [vmem:[#allocation31_spill] sm:$0xff] %v3802_v49  ;;  %v1729_v28 = vmul.f32 %v1714_v6, %v1682_v30  ;;  %v3834_v47 = vrot.slane %v3581_v26, %v1625_v22  ;;  %v3840_v31 = vrot.slane %v3256_v12, %v1625_v22  ;;  %v1725_v10 = vmul.f32 %v3820_v41, %v1690_v16 }
 0x216   :  { %v3827_v49 = vadd.f32 %v2370_v2, %v2299_v55  ;;  %v2002_v0 = vpop.permute.xlu0 %2001  ;;  %v3843_v55 = vrot.slane %v3628_v61, %v1625_v22  ;;  %v3846_v2 = vrot.slane %v3344_v11, %v1625_v22  ;;  %v3856_v12 = vrot.slane %v3289_v29, %v1625_v22 }
 0x217   :  { %v1739_v37 = vadd.f32 %v1729_v28, %v1657_v1  ;;  %v1759_v30 = vpop.permute.xlu1 %1758  ;;  %v1876_v1 = vrot.slane %v3289_v29, %v3781_v3  ;;  %v3862_v28 = vrot.slane %v3344_v11, %v3781_v3  ;;  %v3873_v16 = vrot.slane %v3531_v15, %v3639_v21 }
 0x218   :  { %4220 = vst [vmem:[#allocation32_spill] sm:$0xff] %v3846_v2  ;;  %v1762_v48 = vsel %vm1760_vm2, %v3680_v45, %v1759_v30  ;;  %v1770_v57 = vsel %vm1760_vm2, %v1759_v30, %v3166_v52  ;;  %v3865_v45 = vrot.slane %v3318_v35, %v1625_v22  ;;  %v3869_v52 = vrot.slane %v3318_v35, %v3781_v3 }
 0x219   :  { %v1810_v33 = vmul.f32 %v1795_v38, %v1762_v48  ;;  %4221 = vst [vmem:[#allocation33_spill] sm:$0xff] %v3862_v28  ;;  %v1806_v30 = vmul.f32 %v3840_v31, %v1770_v57  ;;  %v3881_v22 = vrot.slane %v3531_v15, %v3781_v3  ;;  %v1735_v57 = vadd.f32 %v1725_v10, %v1653_v42 }
 0x21a   :  { %v1675_v62 = vpop.permute.xlu0 %1674  ;;  %v3896_v15 = vrot.slane %v3554_v50, %v3781_v3  ;;  %v3908_v42 = vrot.slane %v3581_v26, %v3781_v3 }
 0x21b   :  { %v1820_v48 = vadd.f32 %v1810_v33, %v1739_v37  ;;  %v1681_v29 = vsel %vm1680_vm1, %v3674_v53, %v1675_v62  ;;  %v1840_v11 = vpop.permute.xlu1 %1839  ;;  %v3891_v37 = vrot.slane %v3554_v50, %v3639_v21  ;;  %v1816_v50 = vadd.f32 %v1806_v30, %v1735_v57  ;;  %v4224_v30 = vld [vmem:[#allocation8_spill] sm:$0xff] }
 0x21c   :  { %v1724_v14 = vmul.f32 %v1714_v6, %v1681_v29  ;;  %v1843_v35 = vsel %vm1841_vm3, %v3695_v44, %v1840_v11  ;;  %v1851_v20 = vsel %vm1841_vm3, %v1840_v11, %v3174_v54  ;;  %v3900_v44 = vrot.slane %v3628_v61, %v3418_v23  ;;  %4223 = vst [vmem:[#allocation35_spill] sm:$0xff] %v3908_v42  ;;  %v4229_v42 = vld [vmem:[#allocation9_spill] sm:$0xff] }
 0x21d   :  { %v1887_v53 = vmul.f32 %v3856_v12, %v1851_v20  ;;  %v1891_v33 = vmul.f32 %v1876_v1, %v1843_v35  ;;  %v3904_v54 = vrot.slane %v3581_v26, %v3639_v21  ;;  %v2013_v20 = vsel %vm2003_vm5, %v2002_v0, %v3190_v58 }
 0x21e   :  { %v1734_v6 = vadd.f32 %v1724_v14, %v1652_v63  ;;  %v1757_v29 = vpop.permute.xlu0 %1756  ;;  %v2005_v63 = vsel %vm2003_vm5, %v3723_v59, %v2002_v0  ;;  %v4225_v59 = vld [vmem:[#allocation17_spill] sm:$0xff] }
 0x21f   :  { %4222 = vst [vmem:[#allocation34_spill] sm:$0xff] %v3904_v54  ;;  %v1901_v10 = vadd.f32 %v1891_v33, %v1820_v48  ;;  %v1761_v14 = vsel %vm1760_vm2, %v3689_v8, %v1757_v29  ;;  %v1921_v23 = vpop.permute.xlu1 %1920  ;;  %v2092_v48 = vsel %vm2084_vm6, %v4224_v30, %v3391_v4  ;;  %v1897_v8 = vadd.f32 %v1887_v53, %v1816_v50  ;;  %v4237_v54 = vld [vmem:[#allocation2_spill] sm:$0xff] }
 0x220   :  { %v1805_v11 = vmul.f32 %v1795_v38, %v1761_v14  ;;  %v1924_v26 = vsel %vm1922_vm4, %v3709_v46, %v1921_v23  ;;  %v1932_v58 = vsel %vm1922_vm4, %v1921_v23, %v3182_v56  ;;  %v4226_v38 = vld [vmem:[#allocation7_spill] sm:$0xff]  ;;  %v2049_v46 = vmul.f32 %v3846_v2, %v2013_v20 }
 0x221   :  { %v1968_v35 = vmul.f32 %v3865_v45, %v1932_v58  ;;  %v1972_v57 = vmul.f32 %v3869_v52, %v1924_v26  ;;  %v2091_v0 = vsel %vm2084_vm6, %v4226_v38, %v4225_v59  ;;  %v3938_v56 = vrot.slane %v3605_v51, %v3639_v21  ;;  %v4228_v58 = vld [vmem:[#allocation18_spill] sm:$0xff] }
 0x222   :  { %v1815_v33 = vadd.f32 %v1805_v11, %v1734_v6  ;;  %v1838_v14 = vpop.permute.xlu0 %1837  ;;  %v2053_v4 = vmul.f32 %v3862_v28, %v2005_v63  ;;  %v2172_v20 = vsel %vm2165_vm7, %v4229_v42, %v4228_v58  ;;  %v2130_v6 = vmul.f32 %v3812_v5, %v2092_v48  ;;  %v4230_v11 = vld [vmem:[#allocation20_spill] sm:$0xff]  ;;  %v4231_v59 = vld [vmem:[#allocation10_spill] sm:$0xff]  ;;  %v4235_v42 = vld [vmem:[#allocation21_spill] sm:$0xff] }
 0x223   :  { %4227 = vst [vmem:[#allocation8_spill] sm:$0xff] %v3938_v56  ;;  %v1978_v53 = vadd.f32 %v1968_v35, %v1897_v8  ;;  %v1982_v50 = vadd.f32 %v1972_v57, %v1901_v10  ;;  %v1842_v23 = vsel %vm1841_vm3, %v3703_v7, %v1838_v14  ;;  %v2083_v26 = vpop.permute.xlu1 %2082  ;;  %v2173_v56 = vsel %vm2165_vm7, %v4231_v59, %v4230_v11  ;;  %v4232_v8 = vld [vmem:[#allocation19_spill] sm:$0xff]  ;;  %v4234_v7 = vld [vmem:[#allocation13_spill] sm:$0xff]  ;;  %v4236_v48 = vld [vmem:[#allocation12_spill] sm:$0xff] }
 0x224   :  { %v1886_v63 = vmul.f32 %v1876_v1, %v1842_v23  ;;  %v4233_v10 = vld [vmem:[#allocation11_spill] sm:$0xff]  ;;  %v2334_v57 = vsel %vm2327_vm9, %v4234_v7, %v3405_v13  ;;  %v2254_v2 = vsel %vm2246_vm8, %v4236_v48, %v4235_v42  ;;  %v1689_v1 = vsel %vm1680_vm1, %v1675_v62, %v4237_v54 }
 0x225   :  { %v2253_v35 = vsel %vm2246_vm8, %v4233_v10, %v4232_v8  ;;  %v2059_v28 = vadd.f32 %v2049_v46, %v1978_v53  ;;  %v2063_v58 = vadd.f32 %v2053_v4, %v1982_v50  ;;  %v3970_v8 = vrot.slane %v3605_v51, %v3781_v3  ;;  %v4238_v46 = vld [vmem:[#allocation14_spill] sm:$0xff]  ;;  %v4241_v50 = vld [vmem:[#allocation15_spill] sm:$0xff] }
 0x226   :  { %v1896_v23 = vadd.f32 %v1886_v63, %v1815_v33  ;;  %v1919_v11 = vpop.permute.xlu0 %1918  ;;  %v3973_v10 = vmul.f32 %v3812_v5, %v2091_v0  ;;  %v2211_v13 = vmul.f32 %v3825_v43, %v2173_v56  ;;  %v2335_v42 = vsel %vm2327_vm9, %v4238_v46, %v3415_v34  ;;  %v4239_v5 = vld [vmem:[#allocation3_spill] sm:$0xff]  ;;  %v4240_v56 = vld [vmem:[#allocation22_spill] sm:$0xff]  ;;  %v4243_v63 = vld [vmem:[#allocation16_spill] sm:$0xff] }
 0x227   :  { %v2140_v4 = vadd.f32 %v2130_v6, %v2059_v28  ;;  %v2164_v53 = vpop.permute.xlu1 %2163  ;;  %v3981_v62 = vmul.f32 %v3825_v43, %v2172_v20  ;;  %v3984_v54 = vmul.f32 %v3834_v47, %v2253_v35  ;;  %v3987_v51 = vmul.f32 %v3837_v27, %v2334_v57  ;;  %v4242_v6 = vld [vmem:[#allocation23_spill] sm:$0xff]  ;;  %v4244_v57 = vld [vmem:[#allocation4_spill] sm:$0xff] }
 0x228   :  { %v1769_v0 = vsel %vm1760_vm2, %v1757_v29, %v4239_v5  ;;  %v2292_v33 = vmul.f32 %v3834_v47, %v2254_v2  ;;  %v2415_v34 = vsel %vm2408_vm10, %v4241_v50, %v4240_v56  ;;  %v1720_v43 = vmul.f32 %v3820_v41, %v1689_v1 }
 0x229   :  { %v2221_v28 = vadd.f32 %v2211_v13, %v2140_v4  ;;  %v2373_v20 = vmul.f32 %v3837_v27, %v2335_v42  ;;  %v2416_v35 = vsel %vm2408_vm10, %v4243_v63, %v4242_v6  ;;  %v1850_v29 = vsel %vm1841_vm3, %v1838_v14, %v4244_v57  ;;  %v4245_v13 = vld [vmem:[#allocation25_spill] sm:$0xff] }
 0x22a   :  { %v2086_v47 = vsel %vm2084_vm6, %v3739_v32, %v2083_v26  ;;  %v4009_v2 = vpop.permute.xlu0 %2400  ;;  %v1801_v41 = vmul.f32 %v3840_v31, %v1769_v0  ;;  %v2094_v27 = vsel %vm2084_vm6, %v2083_v26, %v4224_v30  ;;  %v1923_v1 = vsel %vm1922_vm4, %v3717_v9, %v1919_v11  ;;  %v4246_v4 = vld [vmem:[#allocation5_spill] sm:$0xff] }
 0x22b   :  { %v2411_v14 = vsel %vm2408_vm10, %v4245_v13, %v4009_v2  ;;  %v2245_v42 = vpop.permute.xlu1 %2244  ;;  %v1931_v32 = vsel %vm1922_vm4, %v1919_v11, %v4246_v4  ;;  %v2167_v31 = vsel %vm2165_vm7, %v3756_v60, %v2164_v53  ;;  %v2302_v26 = vadd.f32 %v2292_v33, %v2221_v28 }
 0x22c   :  { %v2451_v30 = vmul.f32 %v3900_v44, %v2411_v14  ;;  %v1730_v5 = vadd.f32 %v1720_v43, %v3809_v39  ;;  %v1882_v9 = vmul.f32 %v3856_v12, %v1850_v29  ;;  %v2133_v0 = vmul.f32 %v3873_v16, %v2086_v47 }
 0x22d   :  { %v2175_v56 = vsel %vm2165_vm7, %v2164_v53, %v4231_v59  ;;  %v2134_v57 = vmul.f32 %v3881_v22, %v2094_v27  ;;  %v1967_v11 = vmul.f32 %v3869_v52, %v1923_v1  ;;  %v2383_v14 = vadd.f32 %v2373_v20, %v2302_v26  ;;  %v4251_v26 = vld [vmem:[#allocation33_spill] sm:$0xff] }
 0x22e   :  { %v4038_v13 = vadd.f32 %v2451_v30, %v3827_v49  ;;  %v2081_v60 = vpop.permute.xlu0 %2080  ;;  %v1811_v33 = vadd.f32 %v1801_v41, %v1730_v5  ;;  %v1963_v39 = vmul.f32 %v3865_v45, %v1931_v32  ;;  %v2214_v12 = vmul.f32 %v3891_v37, %v2167_v31  ;;  %v4249_v32 = vld [vmem:[#allocation35_spill] sm:$0xff]  ;;  %v4250_v31 = vld [vmem:[#allocation32_spill] sm:$0xff] }
 0x22f   :  { %v2326_v43 = vpop.permute.xlu1 %2325  ;;  %v4044_v28 = vrot.slane %v3628_v61, %v3639_v21  ;;  %v4047_v59 = vmul.f32 %v3843_v55, %v2415_v34  ;;  %v2454_v52 = vmul.f32 %v3843_v55, %v2416_v35  ;;  %v2215_v49 = vmul.f32 %v3896_v15, %v2175_v56 }
 0x230   :  { %v4053_v53 = vrot.slane %v3628_v61, %v3781_v3  ;;  %v4057_v45 = vmul.f32 %v3672_v25, %v3672_v25  ;;  %v1892_v20 = vadd.f32 %v1882_v9, %v1811_v33  ;;  %v2143_v29 = vadd.f32 %v2133_v0, %v3733_v36  ;;  %v4252_v9 = vld [vmem:[#allocation9_spill] sm:$0xff] }
 0x231   :  { %v2085_v21 = vsel %vm2084_vm6, %v3749_v19, %v2081_v60  ;;  %v2144_v34 = vadd.f32 %v2134_v57, %v2063_v58  ;;  %v1977_v47 = vadd.f32 %v1967_v11, %v1896_v23  ;;  %v2248_v55 = vsel %vm2246_vm8, %v3772_v24, %v2245_v42 }
 0x232   :  { %v2256_v61 = vsel %vm2246_vm8, %v2245_v42, %v4236_v48  ;;  %v2162_v3 = vpop.permute.xlu0 %2161  ;;  %v1973_v35 = vadd.f32 %v1963_v39, %v1892_v20  ;;  %v2224_v41 = vadd.f32 %v2214_v12, %v2143_v29  ;;  %v2093_v36 = vsel %vm2084_vm6, %v2081_v60, %v4226_v38  ;;  %v4247_v48 = vld [vmem:[#allocation6_spill] sm:$0xff]  ;;  %v4253_v60 = vld [vmem:[#allocation28_spill] sm:$0xff]  ;;  %v4254_v39 = vld [vmem:[#allocation11_spill] sm:$0xff] }
 0x233   :  { %v2166_v19 = vsel %vm2165_vm7, %v3765_v17, %v2162_v3  ;;  %v2000_v58 = vpop.permute.xlu1 %1999  ;;  %v2225_v23 = vadd.f32 %v2215_v49, %v2144_v34  ;;  %v2128_v27 = vmul.f32 %v3873_v16, %v2085_v21  ;;  %v4248_v42 = vld [vmem:[#allocation34_spill] sm:$0xff]  ;;  %v2296_v38 = vmul.f32 %v4249_v32, %v2256_v61  ;;  %v4256_v29 = vld [vmem:[#allocation29_spill] sm:$0xff] }
 0x234   :  { %v2004_v24 = vsel %vm2003_vm5, %v3731_v40, %v2000_v58  ;;  %v2012_v1 = vsel %vm2003_vm5, %v2000_v58, %v4247_v48  ;;  %v2295_v4 = vmul.f32 %v4248_v42, %v2248_v55  ;;  %v2129_v5 = vmul.f32 %v3881_v22, %v2093_v36  ;;  %v4255_v22 = vld [vmem:[#allocation27_spill] sm:$0xff]  ;;  %v4257_v55 = vld [vmem:[#allocation24_spill] sm:$0xff] }
 0x235   :  { %v2044_v30 = vmul.f32 %v4250_v31, %v2012_v1  ;;  %v2048_v17 = vmul.f32 %v4251_v26, %v2004_v24  ;;  %v2174_v16 = vsel %vm2165_vm7, %v2162_v3, %v4252_v9  ;;  %v2209_v40 = vmul.f32 %v3891_v37, %v2166_v19 }
 0x236   :  { %v2243_v0 = vpop.permute.xlu0 %2242  ;;  %v2464_v56 = vadd.f32 %v2454_v52, %v2383_v14  ;;  %v2138_v20 = vadd.f32 %v2128_v27, %v4255_v22  ;;  %v2329_v21 = vsel %vm2327_vm9, %v4256_v29, %v2326_v43  ;;  %v2210_v52 = vmul.f32 %v3896_v15, %v2174_v16  ;;  %v4259_v15 = vld [vmem:[#allocation30_spill] sm:$0xff] }
 0x237   :  { %v2054_v57 = vadd.f32 %v2044_v30, %v1973_v35  ;;  %v2058_v11 = vadd.f32 %v2048_v17, %v1977_v47  ;;  %v2247_v33 = vsel %vm2246_vm8, %v4253_v60, %v2243_v0  ;;  %v2255_v12 = vsel %vm2246_vm8, %v2243_v0, %v4254_v39  ;;  %v2399_v49 = vpop.permute.xlu1 %2398 }
 0x238   :  { %v2290_v37 = vmul.f32 %v4248_v42, %v2247_v33  ;;  %v2414_v14 = vsel %vm2408_vm10, %v4242_v6, %v2399_v49  ;;  %v2337_v3 = vsel %vm2327_vm9, %v2326_v43, %v4238_v46  ;;  %v2219_v35 = vadd.f32 %v2209_v40, %v2138_v20  ;;  %v4258_v6 = vld [vmem:[#allocation26_spill] sm:$0xff]  ;;  %v4260_v43 = vld [vmem:[#allocation8_spill] sm:$0xff] }
 0x239   :  { %v2135_v34 = vadd.f32 %v3973_v10, %v2054_v57  ;;  %v2139_v47 = vadd.f32 %v2129_v5, %v2058_v11  ;;  %v2455_v61 = vmul.f32 %v4257_v55, %v2414_v14  ;;  %v2291_v36 = vmul.f32 %v4249_v32, %v2255_v12 }
 0x23a   :  { %v2470_v19 = vmul.f32 %v2464_v56, %v2464_v56  ;;  %v2324_v58 = vpop.permute.xlu0 %2323  ;;  %v2300_v42 = vadd.f32 %v2290_v37, %v2219_v35  ;;  %v2376_v5 = vmul.f32 %v4260_v43, %v2329_v21  ;;  %v2377_v9 = vmul.f32 %v3970_v8, %v2337_v3 }
 0x23b   :  { %v2216_v27 = vadd.f32 %v3981_v62, %v2135_v34  ;;  %v2220_v24 = vadd.f32 %v2210_v52, %v2139_v47  ;;  %v2465_v48 = vadd.f32 %v2455_v61, %v4258_v6  ;;  %v2328_v10 = vsel %vm2327_vm9, %v4259_v15, %v2324_v58  ;;  %v2403_v1 = vpop.permute.xlu1 %2402 }
 0x23c   :  { %v2336_v46 = vsel %vm2327_vm9, %v2324_v58, %v4234_v7  ;;  %v2371_v31 = vmul.f32 %v4260_v43, %v2328_v10  ;;  %v2412_v32 = vsel %vm2408_vm10, %v2399_v49, %v2403_v1  ;;  %v2306_v49 = vadd.f32 %v2296_v38, %v2225_v23 }
 0x23d   :  { %v2297_v62 = vadd.f32 %v3984_v54, %v2216_v27  ;;  %v2301_v30 = vadd.f32 %v2291_v36, %v2220_v24  ;;  %v2472_v26 = vmul.f32 %v2465_v48, %v2465_v48  ;;  %v2474_v17 = vmul.f32 %v2465_v48, %v2464_v56  ;;  %v4261_v56 = vld [vmem:[#allocation31_spill] sm:$0xff] }
 0x23e   :  { %v2372_v16 = vmul.f32 %v3970_v8, %v2336_v46  ;;  %v2456_v40 = vmul.f32 %v3900_v44, %v2412_v32  ;;  %v2405_v0 = vpop.permute.xlu0 %2404  ;;  %v2381_v57 = vadd.f32 %v2371_v31, %v2300_v42  ;;  %v2305_v44 = vadd.f32 %v2295_v4, %v2224_v41 }
 0x23f   :  { %v2492_v7 = vadd.f32 %v2472_v26, %v2470_v19  ;;  %v2378_v11 = vadd.f32 %v3987_v51, %v2297_v62  ;;  %v2409_v54 = vsel %vm2408_vm10, %v4009_v2, %v2405_v0  ;;  %v2407_v60 = vpop.permute.xlu1 %2406  ;;  %v2417_v12 = vsel %vm2408_vm10, %v2405_v0, %v4241_v50 }
 0x240   :  { %v2382_v33 = vadd.f32 %v2372_v16, %v2301_v30  ;;  %v2466_v39 = vadd.f32 %v2456_v40, %v4261_v56  ;;  %v2452_v8 = vmul.f32 %v4044_v28, %v2409_v54  ;;  %v2453_v22 = vmul.f32 %v4053_v53, %v2417_v12 }
 0x241   :  { %v2459_v51 = vadd.f32 %v4047_v59, %v2378_v11  ;;  %v2410_v2 = vsel %vm2408_vm10, %v2403_v1, %v2407_v60  ;;  %v2418_v21 = vsel %vm2408_vm10, %v2407_v60, %v4243_v63  ;;  %v2386_v23 = vadd.f32 %v2376_v5, %v2305_v44 }
 0x242   :  { %v2476_v20 = vsub.f32 %v2466_v39, %v2470_v19  ;;  %v2462_v29 = vadd.f32 %v2452_v8, %v2381_v57  ;;  %v2463_v37 = vadd.f32 %v2453_v22, %v2382_v33  ;;  %v2457_v41 = vmul.f32 %v4044_v28, %v2410_v2 }
 0x243   :  { %v2469_v14 = vmul.f32 %v2459_v51, %v2459_v51  ;;  %v2473_v50 = vmul.f32 %v3672_v25, %v2459_v51  ;;  %v2387_v4 = vadd.f32 %v2377_v9, %v2306_v49  ;;  %v2458_v59 = vmul.f32 %v4053_v53, %v2418_v21 }
 0x244   :  { %v2477_v38 = vsub.f32 %v2462_v29, %v4057_v45  ;;  %v2467_v18 = vadd.f32 %v2457_v41, %v2386_v23  ;;  %v2482_v61 = vmul.f32 2.0, %v2474_v17  ;;  %v2494_v15 = vadd.f32 0.0001, %v2492_v7 }
 0x245   :  { %v2475_v52 = vsub.f32 %v4038_v13, %v2469_v14  ;;  %v2479_v34 = vsub.f32 %v2463_v37, %v2473_v50  ;;  %v2481_v47 = vmul.f32 2.0, %v2473_v50  ;;  %v2491_v55 = vadd.f32 %v4057_v45, %v2469_v14 }
 0x246   :  { %v2468_v63 = vadd.f32 %v2458_v59, %v2387_v4  ;;  %v2478_v36 = vsub.f32 %v2467_v18, %v2472_v26  ;;  %v2484_v53 = vadd.f32 0.0001, %v2482_v61 }
 0x247   :  { %v2485_v3 = vmul.f32 2.0, %v2479_v34  ;;  %v2495_v35 = vadd.f32 %v2477_v38, %v2475_v52  ;;  %v2483_v25 = vadd.f32 0.0001, %v2481_v47  ;;  %v2493_v58 = vadd.f32 0.0001, %v2491_v55 }
 0x248   :  { %v2480_v28 = vsub.f32 %v2468_v63, %v2474_v17  ;;  %v2496_v6 = vadd.f32 %v2478_v36, %v2476_v20 }
 0x249   :  { %v2487_v19 = vadd.f32 0.0009, %v2485_v3  ;;  %v2497_v27 = vadd.f32 0.0009, %v2495_v35 }
 0x24a   :  { %v2486_v24 = vmul.f32 2.0, %v2480_v28  ;;  %v2498_v1 = vadd.f32 0.0009, %v2496_v6 }
 0x24b   :  { %v2489_v48 = vmul.f32 %v2487_v19, %v2483_v25  ;;  %v2499_v13 = vmul.f32 %v2497_v27, %v2493_v58 }
 0x24c   :  { %v2488_v10 = vadd.f32 0.0009, %v2486_v24  ;;  %v2500_v42 = vmul.f32 %v2498_v1, %v2494_v15 }
 0x24d   :  { %2738 = vrcp.f32 %v2499_v13 }
 0x24e   :  { %v2490_v45 = vmul.f32 %v2488_v10, %v2484_v53  ;;  %2740 = vrcp.f32 %v2500_v42 }
 0x257   :  { %v2739_v46 = vpop.eup %2738 }
 0x258   :  { %v2502_v43 = vmul.f32 %v2739_v46, %v2489_v48  ;;  %v2741_v31 = vpop.eup %2740 }
 0x259   :  { %v2504_v32 = vmul.f32 %v2741_v31, %v2490_v45 }
 0x25b   :  { %v2505_v62 = vadd.f32 %v2504_v32, %v2502_v43 }
 0x25d   :  { %v2506_v30 = vrot.slane %v2505_v62, 4 }
 0x25f   :  { %v2507_v26 = vadd.f32 %v2506_v30, %v2505_v62 }
 0x261   :  { %v2508_v17 = vrot.slane %v2507_v26, 2 }
 0x263   :  { %v2509_v5 = vadd.f32 %v2508_v17, %v2507_v26 }
 0x265   :  { %v2510_v9 = vrot.slane %v2509_v5, 1 }
 0x267   :  { %v2511_v16 = vadd.f32 %v2510_v9, %v2509_v5 }
 0x269   :  { %2512 = vst [vmem:[%s4157_s4] sm:$0x1] %v2511_v16 }

</bundles_post_ra>
